<compile_context>
chip_gen: v7x
topology: tpu7x:2x2x1
jax: 0.10.0
libtpu: 0.0.40
codegen_flags: <defaults>
</compile_context>

<pallas_src>
import functools

import jax
import jax.numpy as jnp
from jax import lax
from jax.experimental import pallas as pl
from jax.experimental.pallas import tpu as pltpu


def _lstm_linear_kernel(T, B, Bp,
                        tok_ref, gate_tbl_ref, w_hh_ref, w_out_ref, b_out_ref,
                        o_ref, gx_ref, hs_ref):
    """Fused embedding-gather + LSTM recurrence + output Linear.

    Layouts (all f32 except tokens; gate blocks lane-padded to GP = 128):
      tok_ref:      (T*B,) int32 SMEM   tokens, time-major flattened
      gate_tbl_ref: (256, 4*GP) VMEM    emb @ W_ih + (b_ih + b_hh), per-gate
                                        columns zero-padded to GP lanes
      w_hh_ref:     (GP, 4*GP)  VMEM    hidden->gates (rows/cols F..GP-1 zero)
      w_out_ref:    (GP, V)     VMEM    Linear weight.T (rows F..GP-1 zero)
      b_out_ref:    (1, V)      VMEM    Linear bias
      o_ref:        (T*Bp, V)   VMEM    logits, time-major, sublane-padded batch
      gx_ref:       (T*Bp, 4*GP) VMEM scratch  per-step input-gate slab
      hs_ref:       (T*Bp, GP)   VMEM scratch  hidden state of every timestep
    """
    GP = w_hh_ref.shape[0]

    # Zero the gate slab so padded batch rows (B..Bp-1) are well-defined zeros
    # (they then carry h = c = 0 through the recurrence and never touch the
    # real rows: matmul / elementwise rows are independent).
    gx_ref[...] = jnp.zeros_like(gx_ref)

    # Fused Embedding + input projection + bias: gather one lane-dense
    # (1, 4*GP) row of the precomputed gate table per (t, b) token.
    for t in range(T):
        for b in range(B):
            idx = tok_ref[t * B + b]
            gx_ref[pl.ds(t * Bp + b, 1), :] = gate_tbl_ref[pl.ds(idx, 1), :]

    w_hh = w_hh_ref[...]

    h = jnp.zeros((Bp, GP), jnp.float32)
    c = jnp.zeros((Bp, GP), jnp.float32)

    def sigmoid(x):
        # Single-EUP-op sigmoid: sigma(x) = 0.5 * tanh(0.5 * x) + 0.5
        return 0.5 * jnp.tanh(0.5 * x) + 0.5

    # Fully unrolled recurrence (T is a small static trip count).  Each step:
    # one aligned (Bp, 4*GP) VMEM load, one (Bp,GP)x(GP,4*GP) MXU matmul, gate
    # nonlinearities, and one aligned (Bp, GP) tile store.
    for t in range(T):
        g = gx_ref[t * Bp:(t + 1) * Bp, :] + jnp.dot(
            h, w_hh, preferred_element_type=jnp.float32)        # (Bp, 4*GP)
        # Lane-aligned 128-wide gate slices; gate order matches PyTorch i,f,g,o.
        i_g = sigmoid(g[:, 0 * GP:1 * GP])
        f_g = sigmoid(g[:, 1 * GP:2 * GP])
        g_g = jnp.tanh(g[:, 2 * GP:3 * GP])
        o_g = sigmoid(g[:, 3 * GP:4 * GP])
        c = f_g * c + i_g * g_g
        h = o_g * jnp.tanh(c)
        hs_ref[t * Bp:(t + 1) * Bp, :] = h

    # Hoisted output Linear: one matmul + one dense store for the whole
    # sequence instead of T tiny matmuls / masked partial stores.
    o_ref[...] = (
        jnp.dot(hs_ref[...], w_out_ref[...], preferred_element_type=jnp.float32)
        + b_out_ref[...]
    )


def prepare_params(params):
    """One-time static prep: pad gate blocks to 128 lanes, fold biases, and
    precompute the embedding gate table  G[v] = emb[v] @ W_ih + (b_ih + b_hh).

    Run once outside the per-call forward (weights are static across calls).
    """
    emb, w_ih, w_hh, b_ih, b_hh, w_out, b_out = params
    F = emb.shape[1]
    GP = max(128, ((F + 127) // 128) * 128)   # lane-padded per-gate width

    def pad_gate_cols(w):                      # (..., 4F) -> (..., 4*GP)
        wg = w.reshape(w.shape[:-1] + (4, F))
        wg = jnp.pad(wg, [(0, 0)] * (wg.ndim - 1) + [(0, GP - F)])
        return wg.reshape(w.shape[:-1] + (4 * GP,))

    w_ih_p = pad_gate_cols(w_ih)                                    # (F, 4*GP)
    b_p = pad_gate_cols((b_ih + b_hh).reshape(1, -1))               # (1, 4*GP)
    # Fused Embedding + input projection + bias (padded lanes are exactly 0
    # because w_ih_p / b_p padded columns are 0 by construction of jnp.pad).
    gate_tbl = emb @ w_ih_p + b_p                                   # (256, 4*GP)
    w_hh_p = jnp.pad(pad_gate_cols(w_hh), ((0, GP - F), (0, 0)))    # (GP, 4*GP)
    w_out_p = jnp.pad(w_out, ((0, GP - F), (0, 0)))                 # (GP, V)
    b_out2 = b_out.reshape(1, -1)                                   # (1, V)
    return gate_tbl, w_hh_p, w_out_p, b_out2


def char_rnn_forward(tokens, prepped):
    """tokens: (B, T) int32; prepped from prepare_params.
    Returns (B, T, 256) float32 logits."""
    gate_tbl, w_hh_p, w_out_p, b_out2 = prepped
    B, T = tokens.shape
    GP = w_hh_p.shape[0]
    V = w_out_p.shape[1]
    Bp = ((B + 7) // 8) * 8                    # sublane-padded batch (f32 tile)

    # Tokens in time-major flattened order; live in SMEM for in-kernel gather.
    tok_tm = tokens.T.reshape(-1).astype(jnp.int32)                 # (T*B,)

    cost = pl.CostEstimate(
        flops=2 * T * Bp * (GP * 4 * GP + GP * V),
        transcendentals=5 * T * Bp * GP,
        bytes_accessed=4 * (T * B + 256 * 4 * GP + GP * 4 * GP + GP * V + V
                            + T * Bp * V),
    )

    out_flat = pl.pallas_call(
        functools.partial(_lstm_linear_kernel, T, B, Bp),
        out_shape=jax.ShapeDtypeStruct((T * Bp, V), jnp.float32),
        in_specs=[
            pl.BlockSpec(memory_space=pltpu.MemorySpace.SMEM),   # tokens
            pl.BlockSpec(memory_space=pltpu.MemorySpace.VMEM),   # gate table
            pl.BlockSpec(memory_space=pltpu.MemorySpace.VMEM),   # w_hh
            pl.BlockSpec(memory_space=pltpu.MemorySpace.VMEM),   # w_out
            pl.BlockSpec(memory_space=pltpu.MemorySpace.VMEM),   # b_out
        ],
        out_specs=pl.BlockSpec(memory_space=pltpu.MemorySpace.VMEM),
        scratch_shapes=[pltpu.VMEM((T * Bp, 4 * GP), jnp.float32),
                        pltpu.VMEM((T * Bp, GP), jnp.float32)],
        cost_estimate=cost,
    )(tok_tm, gate_tbl, w_hh_p, w_out_p, b_out2)

    # (T*Bp, V) time-major -> (B, T, V) batch_first: single tiny fused
    # slice+transpose (16 KiB of valid data).
    return out_flat.reshape(T, Bp, V)[:, :B].transpose(1, 0, 2)


def char_rnn_reference(tokens, params):
    """Pure-JAX reference implementing the same PyTorch semantics."""
    emb, w_ih, w_hh, b_ih, b_hh, w_out, b_out = params
    F = emb.shape[1]
    x_emb = jnp.take(emb, tokens, axis=0)          # (B, T, F)
    B = x_emb.shape[0]

    def step(carry, x_t):
        h, c = carry
        gates = x_t @ w_ih + h @ w_hh + b_ih + b_hh
        i_g = jax.nn.sigmoid(gates[:, 0 * F:1 * F])
        f_g = jax.nn.sigmoid(gates[:, 1 * F:2 * F])
        g_g = jnp.tanh(gates[:, 2 * F:3 * F])
        o_g = jax.nn.sigmoid(gates[:, 3 * F:4 * F])
        c_new = f_g * c + i_g * g_g
        h_new = o_g * jnp.tanh(c_new)
        return (h_new, c_new), h_new

    h0 = jnp.zeros((B, F), jnp.float32)
    c0 = jnp.zeros((B, F), jnp.float32)
    _, hs = lax.scan(step, (h0, c0), jnp.transpose(x_emb, (1, 0, 2)))  # (T, B, F)
    hs = jnp.transpose(hs, (1, 0, 2))              # (B, T, F)
    return hs @ w_out + b_out


if __name__ == "__main__":
    FEATURES = 32
    SEQUENCE = 8
    BATCH = 2
    VOCAB = 256

    key = jax.random.PRNGKey(0)
    keys = jax.random.split(key, 8)
    scale = 1.0 / jnp.sqrt(FEATURES)

    emb = jax.random.normal(keys[0], (VOCAB, FEATURES), jnp.float32)
    # Stored pre-transposed relative to PyTorch: (F, 4F) so math is x @ w_ih.
    w_ih = jax.random.uniform(keys[1], (FEATURES, 4 * FEATURES), jnp.float32, -scale, scale)
    w_hh = jax.random.uniform(keys[2], (FEATURES, 4 * FEATURES), jnp.float32, -scale, scale)
    b_ih = jax.random.uniform(keys[3], (4 * FEATURES,), jnp.float32, -scale, scale)
    b_hh = jax.random.uniform(keys[4], (4 * FEATURES,), jnp.float32, -scale, scale)
    w_out = jax.random.uniform(keys[5], (FEATURES, VOCAB), jnp.float32, -scale, scale)
    b_out = jax.random.uniform(keys[6], (VOCAB,), jnp.float32, -scale, scale)
    params = (emb, w_ih, w_hh, b_ih, b_hh, w_out, b_out)

    tokens = jax.random.randint(keys[7], (BATCH, SEQUENCE), 0, VOCAB, jnp.int32)

    # One-time static weight prep (outside the per-call jitted forward).
    prepped = jax.block_until_ready(prepare_params(params))

    forward = jax.jit(char_rnn_forward)
    out = forward(tokens, prepped)
    out = jax.block_until_ready(out)

    ref = char_rnn_reference(tokens, params)
    assert out.shape == (BATCH, SEQUENCE, VOCAB), out.shape
    assert jnp.allclose(out, ref, atol=1e-4, rtol=1e-4), "mismatch vs reference"

    print("KERNEL_OK")
</pallas_src>

<mosaic_0001>
module attributes {stable_mosaic.version = 11 : i64} {
  func.func @_lstm_linear_kernel(%arg0: memref<16xi32, #tpu.memory_space<smem>>, %arg1: memref<256x512xf32, #tpu.memory_space<vmem>>, %arg2: memref<128x512xf32, #tpu.memory_space<vmem>>, %arg3: memref<128x256xf32, #tpu.memory_space<vmem>>, %arg4: memref<1x256xf32, #tpu.memory_space<vmem>>, %arg5: memref<64x256xf32, #tpu.memory_space<vmem>>, %arg6: memref<64x512xf32, #tpu.memory_space<vmem>>, %arg7: memref<64x128xf32, #tpu.memory_space<vmem>>) attributes {dimension_semantics = [], scalar_prefetch = 0 : i64, scratch_operands = 2 : i64, tpu.core_type = #tpu.core_type<tc>} {
    %cst = arith.constant 0.000000e+00 : f32
    %0 = vector.broadcast %cst : f32 to vector<64x512xf32>
    %c0 = arith.constant 0 : index
    %c0_0 = arith.constant 0 : index
    %1 = vector.load %arg6[%c0, %c0_0] : memref<64x512xf32, #tpu.memory_space<vmem>>, vector<64x512xf32>
    tpu.vector_store %arg6[%c0, %c0_0], %0 {strides = array<i32>} : memref<64x512xf32, #tpu.memory_space<vmem>>, vector<64x512xf32>,
    %c0_1 = arith.constant 0 : index
    %2 = memref.load %arg0[%c0_1] : memref<16xi32, #tpu.memory_space<smem>>
    %3 = arith.index_cast %2 : i32 to index
    %c0_2 = arith.constant 0 : index
    %4 = vector.load %arg1[%3, %c0_2] : memref<256x512xf32, #tpu.memory_space<vmem>>, vector<1x512xf32>
    %c0_3 = arith.constant 0 : index
    %c0_4 = arith.constant 0 : index
    %5 = vector.load %arg6[%c0_3, %c0_4] : memref<64x512xf32, #tpu.memory_space<vmem>>, vector<1x512xf32>
    tpu.vector_store %arg6[%c0_3, %c0_4], %4 {strides = array<i32>} : memref<64x512xf32, #tpu.memory_space<vmem>>, vector<1x512xf32>,
    %c1 = arith.constant 1 : index
    %6 = memref.load %arg0[%c1] : memref<16xi32, #tpu.memory_space<smem>>
    %7 = arith.index_cast %6 : i32 to index
    %c0_5 = arith.constant 0 : index
    %8 = vector.load %arg1[%7, %c0_5] : memref<256x512xf32, #tpu.memory_space<vmem>>, vector<1x512xf32>
    %c1_6 = arith.constant 1 : index
    %c0_7 = arith.constant 0 : index
    %9 = vector.load %arg6[%c1_6, %c0_7] : memref<64x512xf32, #tpu.memory_space<vmem>>, vector<1x512xf32>
    tpu.vector_store %arg6[%c1_6, %c0_7], %8 {strides = array<i32>} : memref<64x512xf32, #tpu.memory_space<vmem>>, vector<1x512xf32>,
    %c2 = arith.constant 2 : index
    %10 = memref.load %arg0[%c2] : memref<16xi32, #tpu.memory_space<smem>>
    %11 = arith.index_cast %10 : i32 to index
    %c0_8 = arith.constant 0 : index
    %12 = vector.load %arg1[%11, %c0_8] : memref<256x512xf32, #tpu.memory_space<vmem>>, vector<1x512xf32>
    %c8 = arith.constant 8 : index
    %c0_9 = arith.constant 0 : index
    %13 = vector.load %arg6[%c8, %c0_9] : memref<64x512xf32, #tpu.memory_space<vmem>>, vector<1x512xf32>
    tpu.vector_store %arg6[%c8, %c0_9], %12 {strides = array<i32>} : memref<64x512xf32, #tpu.memory_space<vmem>>, vector<1x512xf32>,
    %c3 = arith.constant 3 : index
    %14 = memref.load %arg0[%c3] : memref<16xi32, #tpu.memory_space<smem>>
    %15 = arith.index_cast %14 : i32 to index
    %c0_10 = arith.constant 0 : index
    %16 = vector.load %arg1[%15, %c0_10] : memref<256x512xf32, #tpu.memory_space<vmem>>, vector<1x512xf32>
    %c9 = arith.constant 9 : index
    %c0_11 = arith.constant 0 : index
    %17 = vector.load %arg6[%c9, %c0_11] : memref<64x512xf32, #tpu.memory_space<vmem>>, vector<1x512xf32>
    tpu.vector_store %arg6[%c9, %c0_11], %16 {strides = array<i32>} : memref<64x512xf32, #tpu.memory_space<vmem>>, vector<1x512xf32>,
    %c4 = arith.constant 4 : index
    %18 = memref.load %arg0[%c4] : memref<16xi32, #tpu.memory_space<smem>>
    %19 = arith.index_cast %18 : i32 to index
    %c0_12 = arith.constant 0 : index
    %20 = vector.load %arg1[%19, %c0_12] : memref<256x512xf32, #tpu.memory_space<vmem>>, vector<1x512xf32>
    %c16 = arith.constant 16 : index
    %c0_13 = arith.constant 0 : index
    %21 = vector.load %arg6[%c16, %c0_13] : memref<64x512xf32, #tpu.memory_space<vmem>>, vector<1x512xf32>
    tpu.vector_store %arg6[%c16, %c0_13], %20 {strides = array<i32>} : memref<64x512xf32, #tpu.memory_space<vmem>>, vector<1x512xf32>,
    %c5 = arith.constant 5 : index
    %22 = memref.load %arg0[%c5] : memref<16xi32, #tpu.memory_space<smem>>
    %23 = arith.index_cast %22 : i32 to index
    %c0_14 = arith.constant 0 : index
    %24 = vector.load %arg1[%23, %c0_14] : memref<256x512xf32, #tpu.memory_space<vmem>>, vector<1x512xf32>
    %c17 = arith.constant 17 : index
    %c0_15 = arith.constant 0 : index
    %25 = vector.load %arg6[%c17, %c0_15] : memref<64x512xf32, #tpu.memory_space<vmem>>, vector<1x512xf32>
    tpu.vector_store %arg6[%c17, %c0_15], %24 {strides = array<i32>} : memref<64x512xf32, #tpu.memory_space<vmem>>, vector<1x512xf32>,
    %c6 = arith.constant 6 : index
    %26 = memref.load %arg0[%c6] : memref<16xi32, #tpu.memory_space<smem>>
    %27 = arith.index_cast %26 : i32 to index
    %c0_16 = arith.constant 0 : index
    %28 = vector.load %arg1[%27, %c0_16] : memref<256x512xf32, #tpu.memory_space<vmem>>, vector<1x512xf32>
    %c24 = arith.constant 24 : index
    %c0_17 = arith.constant 0 : index
    %29 = vector.load %arg6[%c24, %c0_17] : memref<64x512xf32, #tpu.memory_space<vmem>>, vector<1x512xf32>
    tpu.vector_store %arg6[%c24, %c0_17], %28 {strides = array<i32>} : memref<64x512xf32, #tpu.memory_space<vmem>>, vector<1x512xf32>,
    %c7 = arith.constant 7 : index
    %30 = memref.load %arg0[%c7] : memref<16xi32, #tpu.memory_space<smem>>
    %31 = arith.index_cast %30 : i32 to index
    %c0_18 = arith.constant 0 : index
    %32 = vector.load %arg1[%31, %c0_18] : memref<256x512xf32, #tpu.memory_space<vmem>>, vector<1x512xf32>
    %c25 = arith.constant 25 : index
    %c0_19 = arith.constant 0 : index
    %33 = vector.load %arg6[%c25, %c0_19] : memref<64x512xf32, #tpu.memory_space<vmem>>, vector<1x512xf32>
    tpu.vector_store %arg6[%c25, %c0_19], %32 {strides = array<i32>} : memref<64x512xf32, #tpu.memory_space<vmem>>, vector<1x512xf32>,
    %c8_20 = arith.constant 8 : index
    %34 = memref.load %arg0[%c8_20] : memref<16xi32, #tpu.memory_space<smem>>
    %35 = arith.index_cast %34 : i32 to index
    %c0_21 = arith.constant 0 : index
    %36 = vector.load %arg1[%35, %c0_21] : memref<256x512xf32, #tpu.memory_space<vmem>>, vector<1x512xf32>
    %c32 = arith.constant 32 : index
    %c0_22 = arith.constant 0 : index
    %37 = vector.load %arg6[%c32, %c0_22] : memref<64x512xf32, #tpu.memory_space<vmem>>, vector<1x512xf32>
    tpu.vector_store %arg6[%c32, %c0_22], %36 {strides = array<i32>} : memref<64x512xf32, #tpu.memory_space<vmem>>, vector<1x512xf32>,
    %c9_23 = arith.constant 9 : index
    %38 = memref.load %arg0[%c9_23] : memref<16xi32, #tpu.memory_space<smem>>
    %39 = arith.index_cast %38 : i32 to index
    %c0_24 = arith.constant 0 : index
    %40 = vector.load %arg1[%39, %c0_24] : memref<256x512xf32, #tpu.memory_space<vmem>>, vector<1x512xf32>
    %c33 = arith.constant 33 : index
    %c0_25 = arith.constant 0 : index
    %41 = vector.load %arg6[%c33, %c0_25] : memref<64x512xf32, #tpu.memory_space<vmem>>, vector<1x512xf32>
    tpu.vector_store %arg6[%c33, %c0_25], %40 {strides = array<i32>} : memref<64x512xf32, #tpu.memory_space<vmem>>, vector<1x512xf32>,
    %c10 = arith.constant 10 : index
    %42 = memref.load %arg0[%c10] : memref<16xi32, #tpu.memory_space<smem>>
    %43 = arith.index_cast %42 : i32 to index
    %c0_26 = arith.constant 0 : index
    %44 = vector.load %arg1[%43, %c0_26] : memref<256x512xf32, #tpu.memory_space<vmem>>, vector<1x512xf32>
    %c40 = arith.constant 40 : index
    %c0_27 = arith.constant 0 : index
    %45 = vector.load %arg6[%c40, %c0_27] : memref<64x512xf32, #tpu.memory_space<vmem>>, vector<1x512xf32>
    tpu.vector_store %arg6[%c40, %c0_27], %44 {strides = array<i32>} : memref<64x512xf32, #tpu.memory_space<vmem>>, vector<1x512xf32>,
    %c11 = arith.constant 11 : index
    %46 = memref.load %arg0[%c11] : memref<16xi32, #tpu.memory_space<smem>>
    %47 = arith.index_cast %46 : i32 to index
    %c0_28 = arith.constant 0 : index
    %48 = vector.load %arg1[%47, %c0_28] : memref<256x512xf32, #tpu.memory_space<vmem>>, vector<1x512xf32>
    %c41 = arith.constant 41 : index
    %c0_29 = arith.constant 0 : index
    %49 = vector.load %arg6[%c41, %c0_29] : memref<64x512xf32, #tpu.memory_space<vmem>>, vector<1x512xf32>
    tpu.vector_store %arg6[%c41, %c0_29], %48 {strides = array<i32>} : memref<64x512xf32, #tpu.memory_space<vmem>>, vector<1x512xf32>,
    %c12 = arith.constant 12 : index
    %50 = memref.load %arg0[%c12] : memref<16xi32, #tpu.memory_space<smem>>
    %51 = arith.index_cast %50 : i32 to index
    %c0_30 = arith.constant 0 : index
    %52 = vector.load %arg1[%51, %c0_30] : memref<256x512xf32, #tpu.memory_space<vmem>>, vector<1x512xf32>
    %c48 = arith.constant 48 : index
    %c0_31 = arith.constant 0 : index
    %53 = vector.load %arg6[%c48, %c0_31] : memref<64x512xf32, #tpu.memory_space<vmem>>, vector<1x512xf32>
    tpu.vector_store %arg6[%c48, %c0_31], %52 {strides = array<i32>} : memref<64x512xf32, #tpu.memory_space<vmem>>, vector<1x512xf32>,
    %c13 = arith.constant 13 : index
    %54 = memref.load %arg0[%c13] : memref<16xi32, #tpu.memory_space<smem>>
    %55 = arith.index_cast %54 : i32 to index
    %c0_32 = arith.constant 0 : index
    %56 = vector.load %arg1[%55, %c0_32] : memref<256x512xf32, #tpu.memory_space<vmem>>, vector<1x512xf32>
    %c49 = arith.constant 49 : index
    %c0_33 = arith.constant 0 : index
    %57 = vector.load %arg6[%c49, %c0_33] : memref<64x512xf32, #tpu.memory_space<vmem>>, vector<1x512xf32>
    tpu.vector_store %arg6[%c49, %c0_33], %56 {strides = array<i32>} : memref<64x512xf32, #tpu.memory_space<vmem>>, vector<1x512xf32>,
    %c14 = arith.constant 14 : index
    %58 = memref.load %arg0[%c14] : memref<16xi32, #tpu.memory_space<smem>>
    %59 = arith.index_cast %58 : i32 to index
    %c0_34 = arith.constant 0 : index
    %60 = vector.load %arg1[%59, %c0_34] : memref<256x512xf32, #tpu.memory_space<vmem>>, vector<1x512xf32>
    %c56 = arith.constant 56 : index
    %c0_35 = arith.constant 0 : index
    %61 = vector.load %arg6[%c56, %c0_35] : memref<64x512xf32, #tpu.memory_space<vmem>>, vector<1x512xf32>
    tpu.vector_store %arg6[%c56, %c0_35], %60 {strides = array<i32>} : memref<64x512xf32, #tpu.memory_space<vmem>>, vector<1x512xf32>,
    %c15 = arith.constant 15 : index
    %62 = memref.load %arg0[%c15] : memref<16xi32, #tpu.memory_space<smem>>
    %63 = arith.index_cast %62 : i32 to index
    %c0_36 = arith.constant 0 : index
    %64 = vector.load %arg1[%63, %c0_36] : memref<256x512xf32, #tpu.memory_space<vmem>>, vector<1x512xf32>
    %c57 = arith.constant 57 : index
    %c0_37 = arith.constant 0 : index
    %65 = vector.load %arg6[%c57, %c0_37] : memref<64x512xf32, #tpu.memory_space<vmem>>, vector<1x512xf32>
    tpu.vector_store %arg6[%c57, %c0_37], %64 {strides = array<i32>} : memref<64x512xf32, #tpu.memory_space<vmem>>, vector<1x512xf32>,
    %c0_38 = arith.constant 0 : index
    %c0_39 = arith.constant 0 : index
    %66 = vector.load %arg2[%c0_38, %c0_39] : memref<128x512xf32, #tpu.memory_space<vmem>>, vector<128x512xf32>
    %cst_40 = arith.constant 0.000000e+00 : f32
    %67 = vector.broadcast %cst_40 : f32 to vector<8x128xf32>
    %cst_41 = arith.constant 0.000000e+00 : f32
    %68 = vector.broadcast %cst_41 : f32 to vector<8x128xf32>
    %c0_42 = arith.constant 0 : index
    %c0_43 = arith.constant 0 : index
    %69 = vector.load %arg6[%c0_42, %c0_43] : memref<64x512xf32, #tpu.memory_space<vmem>>, vector<8x512xf32>
    %cst_44 = arith.constant dense<0.000000e+00> : vector<8x512xf32>
    %70 = tpu.matmul %67, %66, %cst_44 {dimension_numbers = #tpu.dot_dimension_numbers<[1], [0], [0], [1], [0, 0, 1, 1], [], []>} : vector<8x128xf32>, vector<128x512xf32>, vector<8x512xf32> -> vector<8x512xf32>
    %71 = arith.addf %69, %70 : vector<8x512xf32>
    %72 = vector.extract_strided_slice %71 {offsets = [0, 0], sizes = [8, 128], strides = [1, 1]} : vector<8x512xf32> to vector<8x128xf32>
    %cst_45 = arith.constant 5.000000e-01 : f32
    %73 = vector.broadcast %cst_45 : f32 to vector<8x128xf32>
    %74 = arith.mulf %73, %72 : vector<8x128xf32>
    %75 = math.tanh %74 : vector<8x128xf32>
    %cst_46 = arith.constant 5.000000e-01 : f32
    %76 = vector.broadcast %cst_46 : f32 to vector<8x128xf32>
    %77 = arith.mulf %76, %75 : vector<8x128xf32>
    %cst_47 = arith.constant 5.000000e-01 : f32
    %78 = vector.broadcast %cst_47 : f32 to vector<8x128xf32>
    %79 = arith.addf %77, %78 : vector<8x128xf32>
    %80 = vector.extract_strided_slice %71 {offsets = [0, 128], sizes = [8, 128], strides = [1, 1]} : vector<8x512xf32> to vector<8x128xf32>
    %cst_48 = arith.constant 5.000000e-01 : f32
    %81 = vector.broadcast %cst_48 : f32 to vector<8x128xf32>
    %82 = arith.mulf %81, %80 : vector<8x128xf32>
    %83 = math.tanh %82 : vector<8x128xf32>
    %cst_49 = arith.constant 5.000000e-01 : f32
    %84 = vector.broadcast %cst_49 : f32 to vector<8x128xf32>
    %85 = arith.mulf %84, %83 : vector<8x128xf32>
    %cst_50 = arith.constant 5.000000e-01 : f32
    %86 = vector.broadcast %cst_50 : f32 to vector<8x128xf32>
    %87 = arith.addf %85, %86 : vector<8x128xf32>
    %88 = vector.extract_strided_slice %71 {offsets = [0, 256], sizes = [8, 128], strides = [1, 1]} : vector<8x512xf32> to vector<8x128xf32>
    %89 = math.tanh %88 : vector<8x128xf32>
    %90 = vector.extract_strided_slice %71 {offsets = [0, 384], sizes = [8, 128], strides = [1, 1]} : vector<8x512xf32> to vector<8x128xf32>
    %cst_51 = arith.constant 5.000000e-01 : f32
    %91 = vector.broadcast %cst_51 : f32 to vector<8x128xf32>
    %92 = arith.mulf %91, %90 : vector<8x128xf32>
    %93 = math.tanh %92 : vector<8x128xf32>
    %cst_52 = arith.constant 5.000000e-01 : f32
    %94 = vector.broadcast %cst_52 : f32 to vector<8x128xf32>
    %95 = arith.mulf %94, %93 : vector<8x128xf32>
    %cst_53 = arith.constant 5.000000e-01 : f32
    %96 = vector.broadcast %cst_53 : f32 to vector<8x128xf32>
    %97 = arith.addf %95, %96 : vector<8x128xf32>
    %98 = arith.mulf %87, %68 : vector<8x128xf32>
    %99 = arith.mulf %79, %89 : vector<8x128xf32>
    %100 = arith.addf %98, %99 : vector<8x128xf32>
    %101 = math.tanh %100 : vector<8x128xf32>
    %102 = arith.mulf %97, %101 : vector<8x128xf32>
    %c0_54 = arith.constant 0 : index
    %c0_55 = arith.constant 0 : index
    %103 = vector.load %arg7[%c0_54, %c0_55] : memref<64x128xf32, #tpu.memory_space<vmem>>, vector<8x128xf32>
    tpu.vector_store %arg7[%c0_54, %c0_55], %102 {strides = array<i32>} : memref<64x128xf32, #tpu.memory_space<vmem>>, vector<8x128xf32>,
    %c8_56 = arith.constant 8 : index
    %c0_57 = arith.constant 0 : index
    %104 = vector.load %arg6[%c8_56, %c0_57] : memref<64x512xf32, #tpu.memory_space<vmem>>, vector<8x512xf32>
    %cst_58 = arith.constant dense<0.000000e+00> : vector<8x512xf32>
    %105 = tpu.matmul %102, %66, %cst_58 {dimension_numbers = #tpu.dot_dimension_numbers<[1], [0], [0], [1], [0, 0, 1, 1], [], []>} : vector<8x128xf32>, vector<128x512xf32>, vector<8x512xf32> -> vector<8x512xf32>
    %106 = arith.addf %104, %105 : vector<8x512xf32>
    %107 = vector.extract_strided_slice %106 {offsets = [0, 0], sizes = [8, 128], strides = [1, 1]} : vector<8x512xf32> to vector<8x128xf32>
    %cst_59 = arith.constant 5.000000e-01 : f32
    %108 = vector.broadcast %cst_59 : f32 to vector<8x128xf32>
    %109 = arith.mulf %108, %107 : vector<8x128xf32>
    %110 = math.tanh %109 : vector<8x128xf32>
    %cst_60 = arith.constant 5.000000e-01 : f32
    %111 = vector.broadcast %cst_60 : f32 to vector<8x128xf32>
    %112 = arith.mulf %111, %110 : vector<8x128xf32>
    %cst_61 = arith.constant 5.000000e-01 : f32
    %113 = vector.broadcast %cst_61 : f32 to vector<8x128xf32>
    %114 = arith.addf %112, %113 : vector<8x128xf32>
    %115 = vector.extract_strided_slice %106 {offsets = [0, 128], sizes = [8, 128], strides = [1, 1]} : vector<8x512xf32> to vector<8x128xf32>
    %cst_62 = arith.constant 5.000000e-01 : f32
    %116 = vector.broadcast %cst_62 : f32 to vector<8x128xf32>
    %117 = arith.mulf %116, %115 : vector<8x128xf32>
    %118 = math.tanh %117 : vector<8x128xf32>
    %cst_63 = arith.constant 5.000000e-01 : f32
    %119 = vector.broadcast %cst_63 : f32 to vector<8x128xf32>
    %120 = arith.mulf %119, %118 : vector<8x128xf32>
    %cst_64 = arith.constant 5.000000e-01 : f32
    %121 = vector.broadcast %cst_64 : f32 to vector<8x128xf32>
    %122 = arith.addf %120, %121 : vector<8x128xf32>
    %123 = vector.extract_strided_slice %106 {offsets = [0, 256], sizes = [8, 128], strides = [1, 1]} : vector<8x512xf32> to vector<8x128xf32>
    %124 = math.tanh %123 : vector<8x128xf32>
    %125 = vector.extract_strided_slice %106 {offsets = [0, 384], sizes = [8, 128], strides = [1, 1]} : vector<8x512xf32> to vector<8x128xf32>
    %cst_65 = arith.constant 5.000000e-01 : f32
    %126 = vector.broadcast %cst_65 : f32 to vector<8x128xf32>
    %127 = arith.mulf %126, %125 : vector<8x128xf32>
    %128 = math.tanh %127 : vector<8x128xf32>
    %cst_66 = arith.constant 5.000000e-01 : f32
    %129 = vector.broadcast %cst_66 : f32 to vector<8x128xf32>
    %130 = arith.mulf %129, %128 : vector<8x128xf32>
    %cst_67 = arith.constant 5.000000e-01 : f32
    %131 = vector.broadcast %cst_67 : f32 to vector<8x128xf32>
    %132 = arith.addf %130, %131 : vector<8x128xf32>
    %133 = arith.mulf %122, %100 : vector<8x128xf32>
    %134 = arith.mulf %114, %124 : vector<8x128xf32>
    %135 = arith.addf %133, %134 : vector<8x128xf32>
    %136 = math.tanh %135 : vector<8x128xf32>
    %137 = arith.mulf %132, %136 : vector<8x128xf32>
    %c8_68 = arith.constant 8 : index
    %c0_69 = arith.constant 0 : index
    %138 = vector.load %arg7[%c8_68, %c0_69] : memref<64x128xf32, #tpu.memory_space<vmem>>, vector<8x128xf32>
    tpu.vector_store %arg7[%c8_68, %c0_69], %137 {strides = array<i32>} : memref<64x128xf32, #tpu.memory_space<vmem>>, vector<8x128xf32>,
    %c16_70 = arith.constant 16 : index
    %c0_71 = arith.constant 0 : index
    %139 = vector.load %arg6[%c16_70, %c0_71] : memref<64x512xf32, #tpu.memory_space<vmem>>, vector<8x512xf32>
    %cst_72 = arith.constant dense<0.000000e+00> : vector<8x512xf32>
    %140 = tpu.matmul %137, %66, %cst_72 {dimension_numbers = #tpu.dot_dimension_numbers<[1], [0], [0], [1], [0, 0, 1, 1], [], []>} : vector<8x128xf32>, vector<128x512xf32>, vector<8x512xf32> -> vector<8x512xf32>
    %141 = arith.addf %139, %140 : vector<8x512xf32>
    %142 = vector.extract_strided_slice %141 {offsets = [0, 0], sizes = [8, 128], strides = [1, 1]} : vector<8x512xf32> to vector<8x128xf32>
    %cst_73 = arith.constant 5.000000e-01 : f32
    %143 = vector.broadcast %cst_73 : f32 to vector<8x128xf32>
    %144 = arith.mulf %143, %142 : vector<8x128xf32>
    %145 = math.tanh %144 : vector<8x128xf32>
    %cst_74 = arith.constant 5.000000e-01 : f32
    %146 = vector.broadcast %cst_74 : f32 to vector<8x128xf32>
    %147 = arith.mulf %146, %145 : vector<8x128xf32>
    %cst_75 = arith.constant 5.000000e-01 : f32
    %148 = vector.broadcast %cst_75 : f32 to vector<8x128xf32>
    %149 = arith.addf %147, %148 : vector<8x128xf32>
    %150 = vector.extract_strided_slice %141 {offsets = [0, 128], sizes = [8, 128], strides = [1, 1]} : vector<8x512xf32> to vector<8x128xf32>
    %cst_76 = arith.constant 5.000000e-01 : f32
    %151 = vector.broadcast %cst_76 : f32 to vector<8x128xf32>
    %152 = arith.mulf %151, %150 : vector<8x128xf32>
    %153 = math.tanh %152 : vector<8x128xf32>
    %cst_77 = arith.constant 5.000000e-01 : f32
    %154 = vector.broadcast %cst_77 : f32 to vector<8x128xf32>
    %155 = arith.mulf %154, %153 : vector<8x128xf32>
    %cst_78 = arith.constant 5.000000e-01 : f32
    %156 = vector.broadcast %cst_78 : f32 to vector<8x128xf32>
    %157 = arith.addf %155, %156 : vector<8x128xf32>
    %158 = vector.extract_strided_slice %141 {offsets = [0, 256], sizes = [8, 128], strides = [1, 1]} : vector<8x512xf32> to vector<8x128xf32>
    %159 = math.tanh %158 : vector<8x128xf32>
    %160 = vector.extract_strided_slice %141 {offsets = [0, 384], sizes = [8, 128], strides = [1, 1]} : vector<8x512xf32> to vector<8x128xf32>
    %cst_79 = arith.constant 5.000000e-01 : f32
    %161 = vector.broadcast %cst_79 : f32 to vector<8x128xf32>
    %162 = arith.mulf %161, %160 : vector<8x128xf32>
    %163 = math.tanh %162 : vector<8x128xf32>
    %cst_80 = arith.constant 5.000000e-01 : f32
    %164 = vector.broadcast %cst_80 : f32 to vector<8x128xf32>
    %165 = arith.mulf %164, %163 : vector<8x128xf32>
    %cst_81 = arith.constant 5.000000e-01 : f32
    %166 = vector.broadcast %cst_81 : f32 to vector<8x128xf32>
    %167 = arith.addf %165, %166 : vector<8x128xf32>
    %168 = arith.mulf %157, %135 : vector<8x128xf32>
    %169 = arith.mulf %149, %159 : vector<8x128xf32>
    %170 = arith.addf %168, %169 : vector<8x128xf32>
    %171 = math.tanh %170 : vector<8x128xf32>
    %172 = arith.mulf %167, %171 : vector<8x128xf32>
    %c16_82 = arith.constant 16 : index
    %c0_83 = arith.constant 0 : index
    %173 = vector.load %arg7[%c16_82, %c0_83] : memref<64x128xf32, #tpu.memory_space<vmem>>, vector<8x128xf32>
    tpu.vector_store %arg7[%c16_82, %c0_83], %172 {strides = array<i32>} : memref<64x128xf32, #tpu.memory_space<vmem>>, vector<8x128xf32>,
    %c24_84 = arith.constant 24 : index
    %c0_85 = arith.constant 0 : index
    %174 = vector.load %arg6[%c24_84, %c0_85] : memref<64x512xf32, #tpu.memory_space<vmem>>, vector<8x512xf32>
    %cst_86 = arith.constant dense<0.000000e+00> : vector<8x512xf32>
    %175 = tpu.matmul %172, %66, %cst_86 {dimension_numbers = #tpu.dot_dimension_numbers<[1], [0], [0], [1], [0, 0, 1, 1], [], []>} : vector<8x128xf32>, vector<128x512xf32>, vector<8x512xf32> -> vector<8x512xf32>
    %176 = arith.addf %174, %175 : vector<8x512xf32>
    %177 = vector.extract_strided_slice %176 {offsets = [0, 0], sizes = [8, 128], strides = [1, 1]} : vector<8x512xf32> to vector<8x128xf32>
    %cst_87 = arith.constant 5.000000e-01 : f32
    %178 = vector.broadcast %cst_87 : f32 to vector<8x128xf32>
    %179 = arith.mulf %178, %177 : vector<8x128xf32>
    %180 = math.tanh %179 : vector<8x128xf32>
    %cst_88 = arith.constant 5.000000e-01 : f32
    %181 = vector.broadcast %cst_88 : f32 to vector<8x128xf32>
    %182 = arith.mulf %181, %180 : vector<8x128xf32>
    %cst_89 = arith.constant 5.000000e-01 : f32
    %183 = vector.broadcast %cst_89 : f32 to vector<8x128xf32>
    %184 = arith.addf %182, %183 : vector<8x128xf32>
    %185 = vector.extract_strided_slice %176 {offsets = [0, 128], sizes = [8, 128], strides = [1, 1]} : vector<8x512xf32> to vector<8x128xf32>
    %cst_90 = arith.constant 5.000000e-01 : f32
    %186 = vector.broadcast %cst_90 : f32 to vector<8x128xf32>
    %187 = arith.mulf %186, %185 : vector<8x128xf32>
    %188 = math.tanh %187 : vector<8x128xf32>
    %cst_91 = arith.constant 5.000000e-01 : f32
    %189 = vector.broadcast %cst_91 : f32 to vector<8x128xf32>
    %190 = arith.mulf %189, %188 : vector<8x128xf32>
    %cst_92 = arith.constant 5.000000e-01 : f32
    %191 = vector.broadcast %cst_92 : f32 to vector<8x128xf32>
    %192 = arith.addf %190, %191 : vector<8x128xf32>
    %193 = vector.extract_strided_slice %176 {offsets = [0, 256], sizes = [8, 128], strides = [1, 1]} : vector<8x512xf32> to vector<8x128xf32>
    %194 = math.tanh %193 : vector<8x128xf32>
    %195 = vector.extract_strided_slice %176 {offsets = [0, 384], sizes = [8, 128], strides = [1, 1]} : vector<8x512xf32> to vector<8x128xf32>
    %cst_93 = arith.constant 5.000000e-01 : f32
    %196 = vector.broadcast %cst_93 : f32 to vector<8x128xf32>
    %197 = arith.mulf %196, %195 : vector<8x128xf32>
    %198 = math.tanh %197 : vector<8x128xf32>
    %cst_94 = arith.constant 5.000000e-01 : f32
    %199 = vector.broadcast %cst_94 : f32 to vector<8x128xf32>
    %200 = arith.mulf %199, %198 : vector<8x128xf32>
    %cst_95 = arith.constant 5.000000e-01 : f32
    %201 = vector.broadcast %cst_95 : f32 to vector<8x128xf32>
    %202 = arith.addf %200, %201 : vector<8x128xf32>
    %203 = arith.mulf %192, %170 : vector<8x128xf32>
    %204 = arith.mulf %184, %194 : vector<8x128xf32>
    %205 = arith.addf %203, %204 : vector<8x128xf32>
    %206 = math.tanh %205 : vector<8x128xf32>
    %207 = arith.mulf %202, %206 : vector<8x128xf32>
    %c24_96 = arith.constant 24 : index
    %c0_97 = arith.constant 0 : index
    %208 = vector.load %arg7[%c24_96, %c0_97] : memref<64x128xf32, #tpu.memory_space<vmem>>, vector<8x128xf32>
    tpu.vector_store %arg7[%c24_96, %c0_97], %207 {strides = array<i32>} : memref<64x128xf32, #tpu.memory_space<vmem>>, vector<8x128xf32>,
    %c32_98 = arith.constant 32 : index
    %c0_99 = arith.constant 0 : index
    %209 = vector.load %arg6[%c32_98, %c0_99] : memref<64x512xf32, #tpu.memory_space<vmem>>, vector<8x512xf32>
    %cst_100 = arith.constant dense<0.000000e+00> : vector<8x512xf32>
    %210 = tpu.matmul %207, %66, %cst_100 {dimension_numbers = #tpu.dot_dimension_numbers<[1], [0], [0], [1], [0, 0, 1, 1], [], []>} : vector<8x128xf32>, vector<128x512xf32>, vector<8x512xf32> -> vector<8x512xf32>
    %211 = arith.addf %209, %210 : vector<8x512xf32>
    %212 = vector.extract_strided_slice %211 {offsets = [0, 0], sizes = [8, 128], strides = [1, 1]} : vector<8x512xf32> to vector<8x128xf32>
    %cst_101 = arith.constant 5.000000e-01 : f32
    %213 = vector.broadcast %cst_101 : f32 to vector<8x128xf32>
    %214 = arith.mulf %213, %212 : vector<8x128xf32>
    %215 = math.tanh %214 : vector<8x128xf32>
    %cst_102 = arith.constant 5.000000e-01 : f32
    %216 = vector.broadcast %cst_102 : f32 to vector<8x128xf32>
    %217 = arith.mulf %216, %215 : vector<8x128xf32>
    %cst_103 = arith.constant 5.000000e-01 : f32
    %218 = vector.broadcast %cst_103 : f32 to vector<8x128xf32>
    %219 = arith.addf %217, %218 : vector<8x128xf32>
    %220 = vector.extract_strided_slice %211 {offsets = [0, 128], sizes = [8, 128], strides = [1, 1]} : vector<8x512xf32> to vector<8x128xf32>
    %cst_104 = arith.constant 5.000000e-01 : f32
    %221 = vector.broadcast %cst_104 : f32 to vector<8x128xf32>
    %222 = arith.mulf %221, %220 : vector<8x128xf32>
    %223 = math.tanh %222 : vector<8x128xf32>
    %cst_105 = arith.constant 5.000000e-01 : f32
    %224 = vector.broadcast %cst_105 : f32 to vector<8x128xf32>
    %225 = arith.mulf %224, %223 : vector<8x128xf32>
    %cst_106 = arith.constant 5.000000e-01 : f32
    %226 = vector.broadcast %cst_106 : f32 to vector<8x128xf32>
    %227 = arith.addf %225, %226 : vector<8x128xf32>
    %228 = vector.extract_strided_slice %211 {offsets = [0, 256], sizes = [8, 128], strides = [1, 1]} : vector<8x512xf32> to vector<8x128xf32>
    %229 = math.tanh %228 : vector<8x128xf32>
    %230 = vector.extract_strided_slice %211 {offsets = [0, 384], sizes = [8, 128], strides = [1, 1]} : vector<8x512xf32> to vector<8x128xf32>
    %cst_107 = arith.constant 5.000000e-01 : f32
    %231 = vector.broadcast %cst_107 : f32 to vector<8x128xf32>
    %232 = arith.mulf %231, %230 : vector<8x128xf32>
    %233 = math.tanh %232 : vector<8x128xf32>
    %cst_108 = arith.constant 5.000000e-01 : f32
    %234 = vector.broadcast %cst_108 : f32 to vector<8x128xf32>
    %235 = arith.mulf %234, %233 : vector<8x128xf32>
    %cst_109 = arith.constant 5.000000e-01 : f32
    %236 = vector.broadcast %cst_109 : f32 to vector<8x128xf32>
    %237 = arith.addf %235, %236 : vector<8x128xf32>
    %238 = arith.mulf %227, %205 : vector<8x128xf32>
    %239 = arith.mulf %219, %229 : vector<8x128xf32>
    %240 = arith.addf %238, %239 : vector<8x128xf32>
    %241 = math.tanh %240 : vector<8x128xf32>
    %242 = arith.mulf %237, %241 : vector<8x128xf32>
    %c32_110 = arith.constant 32 : index
    %c0_111 = arith.constant 0 : index
    %243 = vector.load %arg7[%c32_110, %c0_111] : memref<64x128xf32, #tpu.memory_space<vmem>>, vector<8x128xf32>
    tpu.vector_store %arg7[%c32_110, %c0_111], %242 {strides = array<i32>} : memref<64x128xf32, #tpu.memory_space<vmem>>, vector<8x128xf32>,
    %c40_112 = arith.constant 40 : index
    %c0_113 = arith.constant 0 : index
    %244 = vector.load %arg6[%c40_112, %c0_113] : memref<64x512xf32, #tpu.memory_space<vmem>>, vector<8x512xf32>
    %cst_114 = arith.constant dense<0.000000e+00> : vector<8x512xf32>
    %245 = tpu.matmul %242, %66, %cst_114 {dimension_numbers = #tpu.dot_dimension_numbers<[1], [0], [0], [1], [0, 0, 1, 1], [], []>} : vector<8x128xf32>, vector<128x512xf32>, vector<8x512xf32> -> vector<8x512xf32>
    %246 = arith.addf %244, %245 : vector<8x512xf32>
    %247 = vector.extract_strided_slice %246 {offsets = [0, 0], sizes = [8, 128], strides = [1, 1]} : vector<8x512xf32> to vector<8x128xf32>
    %cst_115 = arith.constant 5.000000e-01 : f32
    %248 = vector.broadcast %cst_115 : f32 to vector<8x128xf32>
    %249 = arith.mulf %248, %247 : vector<8x128xf32>
    %250 = math.tanh %249 : vector<8x128xf32>
    %cst_116 = arith.constant 5.000000e-01 : f32
    %251 = vector.broadcast %cst_116 : f32 to vector<8x128xf32>
    %252 = arith.mulf %251, %250 : vector<8x128xf32>
    %cst_117 = arith.constant 5.000000e-01 : f32
    %253 = vector.broadcast %cst_117 : f32 to vector<8x128xf32>
    %254 = arith.addf %252, %253 : vector<8x128xf32>
    %255 = vector.extract_strided_slice %246 {offsets = [0, 128], sizes = [8, 128], strides = [1, 1]} : vector<8x512xf32> to vector<8x128xf32>
    %cst_118 = arith.constant 5.000000e-01 : f32
    %256 = vector.broadcast %cst_118 : f32 to vector<8x128xf32>
    %257 = arith.mulf %256, %255 : vector<8x128xf32>
    %258 = math.tanh %257 : vector<8x128xf32>
    %cst_119 = arith.constant 5.000000e-01 : f32
    %259 = vector.broadcast %cst_119 : f32 to vector<8x128xf32>
    %260 = arith.mulf %259, %258 : vector<8x128xf32>
    %cst_120 = arith.constant 5.000000e-01 : f32
    %261 = vector.broadcast %cst_120 : f32 to vector<8x128xf32>
    %262 = arith.addf %260, %261 : vector<8x128xf32>
    %263 = vector.extract_strided_slice %246 {offsets = [0, 256], sizes = [8, 128], strides = [1, 1]} : vector<8x512xf32> to vector<8x128xf32>
    %264 = math.tanh %263 : vector<8x128xf32>
    %265 = vector.extract_strided_slice %246 {offsets = [0, 384], sizes = [8, 128], strides = [1, 1]} : vector<8x512xf32> to vector<8x128xf32>
    %cst_121 = arith.constant 5.000000e-01 : f32
    %266 = vector.broadcast %cst_121 : f32 to vector<8x128xf32>
    %267 = arith.mulf %266, %265 : vector<8x128xf32>
    %268 = math.tanh %267 : vector<8x128xf32>
    %cst_122 = arith.constant 5.000000e-01 : f32
    %269 = vector.broadcast %cst_122 : f32 to vector<8x128xf32>
    %270 = arith.mulf %269, %268 : vector<8x128xf32>
    %cst_123 = arith.constant 5.000000e-01 : f32
    %271 = vector.broadcast %cst_123 : f32 to vector<8x128xf32>
    %272 = arith.addf %270, %271 : vector<8x128xf32>
    %273 = arith.mulf %262, %240 : vector<8x128xf32>
    %274 = arith.mulf %254, %264 : vector<8x128xf32>
    %275 = arith.addf %273, %274 : vector<8x128xf32>
    %276 = math.tanh %275 : vector<8x128xf32>
    %277 = arith.mulf %272, %276 : vector<8x128xf32>
    %c40_124 = arith.constant 40 : index
    %c0_125 = arith.constant 0 : index
    %278 = vector.load %arg7[%c40_124, %c0_125] : memref<64x128xf32, #tpu.memory_space<vmem>>, vector<8x128xf32>
    tpu.vector_store %arg7[%c40_124, %c0_125], %277 {strides = array<i32>} : memref<64x128xf32, #tpu.memory_space<vmem>>, vector<8x128xf32>,
    %c48_126 = arith.constant 48 : index
    %c0_127 = arith.constant 0 : index
    %279 = vector.load %arg6[%c48_126, %c0_127] : memref<64x512xf32, #tpu.memory_space<vmem>>, vector<8x512xf32>
    %cst_128 = arith.constant dense<0.000000e+00> : vector<8x512xf32>
    %280 = tpu.matmul %277, %66, %cst_128 {dimension_numbers = #tpu.dot_dimension_numbers<[1], [0], [0], [1], [0, 0, 1, 1], [], []>} : vector<8x128xf32>, vector<128x512xf32>, vector<8x512xf32> -> vector<8x512xf32>
    %281 = arith.addf %279, %280 : vector<8x512xf32>
    %282 = vector.extract_strided_slice %281 {offsets = [0, 0], sizes = [8, 128], strides = [1, 1]} : vector<8x512xf32> to vector<8x128xf32>
    %cst_129 = arith.constant 5.000000e-01 : f32
    %283 = vector.broadcast %cst_129 : f32 to vector<8x128xf32>
    %284 = arith.mulf %283, %282 : vector<8x128xf32>
    %285 = math.tanh %284 : vector<8x128xf32>
    %cst_130 = arith.constant 5.000000e-01 : f32
    %286 = vector.broadcast %cst_130 : f32 to vector<8x128xf32>
    %287 = arith.mulf %286, %285 : vector<8x128xf32>
    %cst_131 = arith.constant 5.000000e-01 : f32
    %288 = vector.broadcast %cst_131 : f32 to vector<8x128xf32>
    %289 = arith.addf %287, %288 : vector<8x128xf32>
    %290 = vector.extract_strided_slice %281 {offsets = [0, 128], sizes = [8, 128], strides = [1, 1]} : vector<8x512xf32> to vector<8x128xf32>
    %cst_132 = arith.constant 5.000000e-01 : f32
    %291 = vector.broadcast %cst_132 : f32 to vector<8x128xf32>
    %292 = arith.mulf %291, %290 : vector<8x128xf32>
    %293 = math.tanh %292 : vector<8x128xf32>
    %cst_133 = arith.constant 5.000000e-01 : f32
    %294 = vector.broadcast %cst_133 : f32 to vector<8x128xf32>
    %295 = arith.mulf %294, %293 : vector<8x128xf32>
    %cst_134 = arith.constant 5.000000e-01 : f32
    %296 = vector.broadcast %cst_134 : f32 to vector<8x128xf32>
    %297 = arith.addf %295, %296 : vector<8x128xf32>
    %298 = vector.extract_strided_slice %281 {offsets = [0, 256], sizes = [8, 128], strides = [1, 1]} : vector<8x512xf32> to vector<8x128xf32>
    %299 = math.tanh %298 : vector<8x128xf32>
    %300 = vector.extract_strided_slice %281 {offsets = [0, 384], sizes = [8, 128], strides = [1, 1]} : vector<8x512xf32> to vector<8x128xf32>
    %cst_135 = arith.constant 5.000000e-01 : f32
    %301 = vector.broadcast %cst_135 : f32 to vector<8x128xf32>
    %302 = arith.mulf %301, %300 : vector<8x128xf32>
    %303 = math.tanh %302 : vector<8x128xf32>
    %cst_136 = arith.constant 5.000000e-01 : f32
    %304 = vector.broadcast %cst_136 : f32 to vector<8x128xf32>
    %305 = arith.mulf %304, %303 : vector<8x128xf32>
    %cst_137 = arith.constant 5.000000e-01 : f32
    %306 = vector.broadcast %cst_137 : f32 to vector<8x128xf32>
    %307 = arith.addf %305, %306 : vector<8x128xf32>
    %308 = arith.mulf %297, %275 : vector<8x128xf32>
    %309 = arith.mulf %289, %299 : vector<8x128xf32>
    %310 = arith.addf %308, %309 : vector<8x128xf32>
    %311 = math.tanh %310 : vector<8x128xf32>
    %312 = arith.mulf %307, %311 : vector<8x128xf32>
    %c48_138 = arith.constant 48 : index
    %c0_139 = arith.constant 0 : index
    %313 = vector.load %arg7[%c48_138, %c0_139] : memref<64x128xf32, #tpu.memory_space<vmem>>, vector<8x128xf32>
    tpu.vector_store %arg7[%c48_138, %c0_139], %312 {strides = array<i32>} : memref<64x128xf32, #tpu.memory_space<vmem>>, vector<8x128xf32>,
    %c56_140 = arith.constant 56 : index
    %c0_141 = arith.constant 0 : index
    %314 = vector.load %arg6[%c56_140, %c0_141] : memref<64x512xf32, #tpu.memory_space<vmem>>, vector<8x512xf32>
    %cst_142 = arith.constant dense<0.000000e+00> : vector<8x512xf32>
    %315 = tpu.matmul %312, %66, %cst_142 {dimension_numbers = #tpu.dot_dimension_numbers<[1], [0], [0], [1], [0, 0, 1, 1], [], []>} : vector<8x128xf32>, vector<128x512xf32>, vector<8x512xf32> -> vector<8x512xf32>
    %316 = arith.addf %314, %315 : vector<8x512xf32>
    %317 = vector.extract_strided_slice %316 {offsets = [0, 0], sizes = [8, 128], strides = [1, 1]} : vector<8x512xf32> to vector<8x128xf32>
    %cst_143 = arith.constant 5.000000e-01 : f32
    %318 = vector.broadcast %cst_143 : f32 to vector<8x128xf32>
    %319 = arith.mulf %318, %317 : vector<8x128xf32>
    %320 = math.tanh %319 : vector<8x128xf32>
    %cst_144 = arith.constant 5.000000e-01 : f32
    %321 = vector.broadcast %cst_144 : f32 to vector<8x128xf32>
    %322 = arith.mulf %321, %320 : vector<8x128xf32>
    %cst_145 = arith.constant 5.000000e-01 : f32
    %323 = vector.broadcast %cst_145 : f32 to vector<8x128xf32>
    %324 = arith.addf %322, %323 : vector<8x128xf32>
    %325 = vector.extract_strided_slice %316 {offsets = [0, 128], sizes = [8, 128], strides = [1, 1]} : vector<8x512xf32> to vector<8x128xf32>
    %cst_146 = arith.constant 5.000000e-01 : f32
    %326 = vector.broadcast %cst_146 : f32 to vector<8x128xf32>
    %327 = arith.mulf %326, %325 : vector<8x128xf32>
    %328 = math.tanh %327 : vector<8x128xf32>
    %cst_147 = arith.constant 5.000000e-01 : f32
    %329 = vector.broadcast %cst_147 : f32 to vector<8x128xf32>
    %330 = arith.mulf %329, %328 : vector<8x128xf32>
    %cst_148 = arith.constant 5.000000e-01 : f32
    %331 = vector.broadcast %cst_148 : f32 to vector<8x128xf32>
    %332 = arith.addf %330, %331 : vector<8x128xf32>
    %333 = vector.extract_strided_slice %316 {offsets = [0, 256], sizes = [8, 128], strides = [1, 1]} : vector<8x512xf32> to vector<8x128xf32>
    %334 = math.tanh %333 : vector<8x128xf32>
    %335 = vector.extract_strided_slice %316 {offsets = [0, 384], sizes = [8, 128], strides = [1, 1]} : vector<8x512xf32> to vector<8x128xf32>
    %cst_149 = arith.constant 5.000000e-01 : f32
    %336 = vector.broadcast %cst_149 : f32 to vector<8x128xf32>
    %337 = arith.mulf %336, %335 : vector<8x128xf32>
    %338 = math.tanh %337 : vector<8x128xf32>
    %cst_150 = arith.constant 5.000000e-01 : f32
    %339 = vector.broadcast %cst_150 : f32 to vector<8x128xf32>
    %340 = arith.mulf %339, %338 : vector<8x128xf32>
    %cst_151 = arith.constant 5.000000e-01 : f32
    %341 = vector.broadcast %cst_151 : f32 to vector<8x128xf32>
    %342 = arith.addf %340, %341 : vector<8x128xf32>
    %343 = arith.mulf %332, %310 : vector<8x128xf32>
    %344 = arith.mulf %324, %334 : vector<8x128xf32>
    %345 = arith.addf %343, %344 : vector<8x128xf32>
    %346 = math.tanh %345 : vector<8x128xf32>
    %347 = arith.mulf %342, %346 : vector<8x128xf32>
    %c56_152 = arith.constant 56 : index
    %c0_153 = arith.constant 0 : index
    %348 = vector.load %arg7[%c56_152, %c0_153] : memref<64x128xf32, #tpu.memory_space<vmem>>, vector<8x128xf32>
    tpu.vector_store %arg7[%c56_152, %c0_153], %347 {strides = array<i32>} : memref<64x128xf32, #tpu.memory_space<vmem>>, vector<8x128xf32>,
    %c0_154 = arith.constant 0 : index
    %c0_155 = arith.constant 0 : index
    %349 = vector.load %arg7[%c0_154, %c0_155] : memref<64x128xf32, #tpu.memory_space<vmem>>, vector<64x128xf32>
    %c0_156 = arith.constant 0 : index
    %c0_157 = arith.constant 0 : index
    %350 = vector.load %arg3[%c0_156, %c0_157] : memref<128x256xf32, #tpu.memory_space<vmem>>, vector<128x256xf32>
    %cst_158 = arith.constant dense<0.000000e+00> : vector<64x256xf32>
    %351 = tpu.matmul %349, %350, %cst_158 {dimension_numbers = #tpu.dot_dimension_numbers<[1], [0], [0], [1], [0, 0, 1, 1], [], []>} : vector<64x128xf32>, vector<128x256xf32>, vector<64x256xf32> -> vector<64x256xf32>
    %c0_159 = arith.constant 0 : index
    %c0_160 = arith.constant 0 : index
    %352 = vector.load %arg4[%c0_159, %c0_160] : memref<1x256xf32, #tpu.memory_space<vmem>>, vector<1x256xf32>
    %353 = vector.broadcast %352 : vector<1x256xf32> to vector<64x256xf32>
    %354 = arith.addf %351, %353 : vector<64x256xf32>
    %c0_161 = arith.constant 0 : index
    %c0_162 = arith.constant 0 : index
    %355 = vector.load %arg5[%c0_161, %c0_162] : memref<64x256xf32, #tpu.memory_space<vmem>>, vector<64x256xf32>
    tpu.vector_store %arg5[%c0_161, %c0_162], %354 {strides = array<i32>} : memref<64x256xf32, #tpu.memory_space<vmem>>, vector<64x256xf32>,
    return
  }
}

</mosaic_0001>

<bundles_post_ra>
// kernel: char_rnn_forward.1
= control target key start
LH: loop header
LB: loop body
LE: loop exit
PB: predicated region body
PF: predicated region fallthrough
CT: control target
= control target key end

     0   :  { %10 = vsyncpa [#allocation6], 0  ;;  %s3381_s0 = inlined_call_operand.vmem [shape: s32[16], index: 0, kind: input, shape index: {}]   ;;  %s3382_s1 = inlined_call_operand.hbm [shape: f32[256,512], index: 1, kind: input, shape index: {}]   ;;  %s3383_s2 = inlined_call_operand.hbm [shape: f32[128,512], index: 2, kind: input, shape index: {}]   ;;  %s3384_s3 = inlined_call_operand.hbm [shape: f32[128,256], index: 3, kind: input, shape index: {}]   ;;  %s3385_s4 = inlined_call_operand.vmem [shape: f32[1,256], index: 4, kind: input, shape index: {}]   ;;  %s3386_s5 = inlined_call_operand.vmem [shape: f32[64,256], index: 5, kind: output, shape index: {}]  }
   0x1   :  { %11 = vsyncpa [#allocation5], 0 }
   0x2   :  { %12 = vsyncpa [#allocation9], 0  ;;  %s19_s20 = sshll.u32 %s3381_s0, 4  ;;  %s2750_s21 = smov [#allocation8]   ;;  %s20_s20 = int_to_ptr.vmem [resolvable:$true] %s19_s20 }
   0x3   :  { %s40_s22 = sshll.u32 %s2750_s21, 4  ;;  %s2666_s25 = scalar_lea.hbm %s3383_s2, 8192  ;;  %s41_s22 = int_to_ptr.vmem [resolvable:$true] %s40_s22 }
   0x4   :  { %p2667_p0 = scmp.ne.s32.totalorder %s3383_s2, %s2666_s25  ;;  %p2670_p1 = scmp.lt.u32.totalorder %s2666_s25, %s3383_s2 }
   0x6   :  { %p2672_p2 = pnand %p2670_p1, %p2667_p0 }
   0x8   :  { %2675 = shalt.err (!%p2672_p2)
}
   0x9   :  { %s2676_s30 = scalar_lea.vmem %s41_s22, 8192  ;;  %p2681_p4 = scmp.lt.s32.totalorder %s41_s22, %s41_s22 }
   0xa   :  { %p2677_p3 = scmp.ne.s32.totalorder %s41_s22, %s2676_s30  ;;  %p2682_p5 = scmp.lt.s32.totalorder %s2676_s30, %s2676_s30 }
   0xc   :  { %p2683_p6 = por %p2682_p5, %p2681_p4 }
   0xe   :  { %p2684_p7 = pnand %p2683_p6, %p2677_p3 }
  0x10   :  { %2687 = shalt.err (!%p2684_p7)
}
  0x11   :  { %s2751_s0 = smov 512   ;;  %s2752_s6 = smov 32  }
  0x12   :  { %46 = dma.hbm_to_vmem [thread:$0]  %s3383_s2, 8192, %s41_s22, [#allocation9], %s2751_s0, %s2751_s0, %s2752_s6  }
  0x13   :  { %s2688_s9 = scalar_lea.vmem %s20_s20, 16  ;;  %p2693_p9 = scmp.lt.s32.totalorder %s20_s20, %s20_s20 }
  0x14   :  { %p2689_p8 = scmp.ne.s32.totalorder %s20_s20, %s2688_s9  ;;  %p2694_p10 = scmp.lt.s32.totalorder %s2688_s9, %s2688_s9 }
  0x16   :  { %p2695_p11 = por %p2694_p10, %p2693_p9 }
  0x18   :  { %p2696_p12 = pnand %p2695_p11, %p2689_p8 }
  0x1a   :  { %2699 = shalt.err (!%p2696_p12)
}
  0x1b   :  { %s2753_s10 = smov [#allocation4]   ;;  %s2754_s11 = smov [#allocation7]  }
  0x1c   :  { %22 = dma.vmem_to_smem %s20_s20, 16, %s2753_s10, [#allocation6]  }
  0x1d   :  { %s28_s12 = sshll.u32 %s2754_s11, 4  ;;  %s2755_s13 = smov [#allocation10]   ;;  %s29_s12 = int_to_ptr.vmem [resolvable:$true] %s28_s12 }
  0x1e   :  { %s52_s14 = sshll.u32 %s2755_s13, 4  ;;  %s2700_s2 = scalar_lea.hbm %s3382_s1, 16384  ;;  %s2807_s14 = int_to_ptr.vmem [resolvable:$true] %s52_s14 }
  0x1f   :  { %p2701_p13 = scmp.ne.s32.totalorder %s3382_s1, %s2700_s2  ;;  %p2704_p0 = scmp.lt.u32.totalorder %s2700_s2, %s3382_s1 }
  0x21   :  { %p2706_p1 = pnand %p2704_p0, %p2701_p13 }
  0x23   :  { %2709 = shalt.err (!%p2706_p1)
}
  0x24   :  { %s2710_s20 = scalar_lea.vmem %s29_s12, 16384  ;;  %p2715_p3 = scmp.lt.s32.totalorder %s29_s12, %s29_s12 }
  0x25   :  { %p2711_p2 = scmp.ne.s32.totalorder %s29_s12, %s2710_s20  ;;  %p2716_p4 = scmp.lt.s32.totalorder %s2710_s20, %s2710_s20 }
  0x27   :  { %p2717_p5 = por %p2716_p4, %p2715_p3 }
  0x29   :  { %p2718_p6 = pnand %p2717_p5, %p2711_p2 }
  0x2b   :  { %2721 = shalt.err (!%p2718_p6)
}
  0x2c   :  { %34 = dma.hbm_to_vmem [thread:$0]  %s3382_s1, 16384, %s29_s12, [#allocation5], %s2751_s0, %s2751_s0, %s2752_s6  }
  0x2d   :  { %s2722_s26 = scalar_lea.hbm %s3384_s3, 4096 }
  0x2e   :  { %p2723_p7 = scmp.ne.s32.totalorder %s3384_s3, %s2722_s26  ;;  %p2726_p8 = scmp.lt.u32.totalorder %s2722_s26, %s3384_s3 }
  0x30   :  { %p2728_p9 = pnand %p2726_p8, %p2723_p7 }
  0x32   :  { %2731 = shalt.err (!%p2728_p9)
}
  0x33   :  { %s2732_s7 = scalar_lea.vmem %s2807_s14, 4096  ;;  %p2737_p11 = scmp.lt.s32.totalorder %s2807_s14, %s2807_s14 }
  0x34   :  { %p2733_p10 = scmp.ne.s32.totalorder %s2807_s14, %s2732_s7  ;;  %p2738_p12 = scmp.lt.s32.totalorder %s2732_s7, %s2732_s7 }
  0x36   :  { %p2739_p13 = por %p2738_p12, %p2737_p11 }
  0x38   :  { %p2740_p0 = pnand %p2739_p13, %p2733_p10 }
  0x3a   :  { %2743 = shalt.err (!%p2740_p0)
}
  0x3b   :  { %s2756_s1 = smov 256   ;;  %s2757_s0 = smov 16  }
  0x3c   :  { %58 = dma.hbm_to_vmem [thread:$0]  %s3384_s3, 4096, %s2807_s14, [#allocation9], %s2756_s1, %s2756_s1, %s2757_s0  }
  0x3d   :  { %2744 = dma.done.wait [#allocation6], 16  }
  0x3e   :  { %2745 = vsyncadd [#allocation6], 4294967280 }
  0x3f   :  { %2746 = dma.done.wait [#allocation5], 16384  }
  0x40   :  { %2747 = vsyncadd [#allocation5], 4294950912 }
  0x41   :  { %2748 = dma.done.wait [#allocation9], 12288  }
  0x42   :  { %2749 = vsyncadd [#allocation9], 4294955008 }
  0x43   :  { %73 = sfence }
  0x44   :  { %v318_v0 = vld [vmem:[#allocation8 + $0x8] sm:$0xff]  ;;  %v317_v2 = vld [vmem:[#allocation8] sm:$0xff]  ;;  %v2758_v7 = vmov 0.0   ;;  %s2876_s3 = sld [smem:[#allocation4]]  ;;  %s2883_s9 = sld [smem:[#allocation4 + $0x1]]  ;;  %v116_v32 = vlaneseq  ;;  %v320_v52 = vld [vmem:[#allocation8 + $0x18] sm:$0xff] }
  0x45   :  { %v322_v1 = vld [vmem:[#allocation8 + $0x28] sm:$0xff]  ;;  %v321_v4 = vld [vmem:[#allocation8 + $0x20] sm:$0xff]  ;;  %449 = vmatprep.mubr.f32.mxu1 %v2758_v7  ;;  %74 = vst [vmem:[#allocation2] sm:$0xff] %v2758_v7  ;;  %75 = vst [vmem:[#allocation2 + $0x8] sm:$0xff] %v2758_v7  ;;  %618 = vmatprep.mubr.f32.mxu0 %v2758_v7  ;;  %s1974_s19 = sld [smem:[#allocation4 + $0x2]]  ;;  %s1977_s21 = sld [smem:[#allocation4 + $0x3]] }
  0x46   :  { %v2841_v3 = vpack.c.bf16 %v322_v1, %v318_v0  ;;  %v326_v5 = vld [vmem:[#allocation8 + $0x48] sm:$0xff]  ;;  %76 = vst [vmem:[#allocation2 + $0x10] sm:$0xff] %v2758_v7  ;;  %77 = vst [vmem:[#allocation2 + $0x18] sm:$0xff] %v2758_v7  ;;  %v2879_v8 = vpack.c.bf16 %v321_v4, %v317_v2  ;;  %v325_v10 = vld [vmem:[#allocation8 + $0x40] sm:$0xff]  ;;  %vm2924_vm0 = vcmp.lt.s32.totalorder %v116_v32, 512  ;;  %s1980_s7 = sld [smem:[#allocation4 + $0x4]] }
  0x47   :  { %v330_v6 = vld [vmem:[#allocation8 + $0x68] sm:$0xff]  ;;  %78 = vst [vmem:[#allocation2 + $0x20] sm:$0xff] %v2758_v7  ;;  %79 = vst [vmem:[#allocation2 + $0x28] sm:$0xff] %v2758_v7  ;;  %v329_v11 = vld [vmem:[#allocation8 + $0x60] sm:$0xff]  ;;  %s1983_s1 = sld [smem:[#allocation4 + $0x5]] }
  0x48   :  { %80 = vst [vmem:[#allocation2 + $0x30] sm:$0xff] %v2758_v7  ;;  %81 = vst [vmem:[#allocation2 + $0x38] sm:$0xff] %v2758_v7  ;;  %v2881_v9 = vpack.c.bf16 %v330_v6, %v326_v5  ;;  %v334_v12 = vld [vmem:[#allocation8 + $0x88] sm:$0xff]  ;;  %2033 = vmatprep.subr.bf16.mxu1 %v2841_v3  ;;  %2097 = vmatprep.subr.bf16.mxu0 %v2841_v3  ;;  %v2888_v14 = vpack.c.bf16 %v329_v11, %v325_v10  ;;  %v333_v16 = vld [vmem:[#allocation8 + $0x80] sm:$0xff] }
  0x49   :  { %82 = vst [vmem:[#allocation2 + $0x40] sm:$0xff] %v2758_v7  ;;  %83 = vst [vmem:[#allocation2 + $0x48] sm:$0xff] %v2758_v7  ;;  %v338_v13 = vld [vmem:[#allocation8 + $0xa8] sm:$0xff]  ;;  %2035 = vmatpush1.bf16.msra.mxu1 %v2879_v8  ;;  %2099 = vmatpush1.bf16.msra.mxu0 %v2879_v8  ;;  %v337_v17 = vld [vmem:[#allocation8 + $0xa0] sm:$0xff] }
  0x4a   :  { %84 = vst [vmem:[#allocation2 + $0x50] sm:$0xff] %v2758_v7  ;;  %85 = vst [vmem:[#allocation2 + $0x58] sm:$0xff] %v2758_v7  ;;  %2037 = vmatprep.subr.bf16.mxu1 %v2881_v9  ;;  %v2892_v15 = vpack.c.bf16 %v338_v13, %v334_v12  ;;  %2101 = vmatprep.subr.bf16.mxu0 %v2881_v9  ;;  %v342_v18 = vld [vmem:[#allocation8 + $0xc8] sm:$0xff]  ;;  %v2896_v20 = vpack.c.bf16 %v337_v17, %v333_v16  ;;  %v341_v22 = vld [vmem:[#allocation8 + $0xc0] sm:$0xff]  ;;  %s107_s10 = sshra.s32 %s2876_s3, 3  ;;  %s123_s11 = sshra.s32 %s2883_s9, 3 }
  0x4b   :  { %86 = vst [vmem:[#allocation2 + $0x60] sm:$0xff] %v2758_v7  ;;  %87 = vst [vmem:[#allocation2 + $0x68] sm:$0xff] %v2758_v7  ;;  %v346_v19 = vld [vmem:[#allocation8 + $0xe8] sm:$0xff]  ;;  %v345_v23 = vld [vmem:[#allocation8 + $0xe0] sm:$0xff]  ;;  %s110_s12 = sand.u32 7, %s2876_s3  ;;  %s2016_s13 = sshll.u32 %s107_s10, 5 }
  0x4c   :  { %88 = vst [vmem:[#allocation2 + $0x70] sm:$0xff] %v2758_v7  ;;  %89 = vst [vmem:[#allocation2 + $0x78] sm:$0xff] %v2758_v7  ;;  %v2900_v21 = vpack.c.bf16 %v346_v19, %v342_v18  ;;  %v350_v24 = vld [vmem:[#allocation8 + $0x108] sm:$0xff]  ;;  %v2906_v26 = vpack.c.bf16 %v345_v23, %v341_v22  ;;  %v349_v28 = vld [vmem:[#allocation8 + $0x100] sm:$0xff]  ;;  %s126_s14 = sand.u32 7, %s2883_s9  ;;  %s2017_s15 = sshll.u32 %s123_s11, 5 }
  0x4d   :  { %90 = vst [vmem:[#allocation2 + $0x80] sm:$0xff] %v2758_v7  ;;  %91 = vst [vmem:[#allocation2 + $0x88] sm:$0xff] %v2758_v7  ;;  %2039 = vmatpush1.bf16.msra.mxu1 %v2888_v14  ;;  %2103 = vmatpush1.bf16.msra.mxu0 %v2888_v14  ;;  %v354_v25 = vld [vmem:[#allocation8 + $0x128] sm:$0xff]  ;;  %v353_v29 = vld [vmem:[#allocation8 + $0x120] sm:$0xff]  ;;  %s113_s16 = sadd.s32 %s2016_s13, %s110_s12  ;;  %s129_s2 = sadd.s32 %s2017_s15, %s126_s14 }
  0x4e   :  { %92 = vst [vmem:[#allocation2 + $0x90] sm:$0xff] %v2758_v7  ;;  %93 = vst [vmem:[#allocation2 + $0x98] sm:$0xff] %v2758_v7  ;;  %2041 = vmatprep.subr.bf16.mxu1 %v2892_v15  ;;  %2105 = vmatprep.subr.bf16.mxu0 %v2892_v15  ;;  %v2911_v27 = vpack.c.bf16 %v354_v25, %v350_v24  ;;  %v358_v30 = vld [vmem:[#allocation8 + $0x148] sm:$0xff]  ;;  %v2916_v33 = vpack.c.bf16 %v353_v29, %v349_v28  ;;  %v357_v35 = vld [vmem:[#allocation8 + $0x140] sm:$0xff]  ;;  %s114_s17 = scalar_lea.vmem [#allocation7], %s113_s16  ;;  %s130_s18 = scalar_lea.vmem [#allocation7], %s129_s2 }
  0x4f   :  { %94 = vst [vmem:[#allocation2 + $0xa0] sm:$0xff] %v2758_v7  ;;  %95 = vst [vmem:[#allocation2 + $0xa8] sm:$0xff] %v2758_v7  ;;  %v362_v31 = vld [vmem:[#allocation8 + $0x168] sm:$0xff]  ;;  %v361_v36 = vld [vmem:[#allocation8 + $0x160] sm:$0xff]  ;;  %s136_s20 = sshra.s32 %s1974_s19, 3  ;;  %s139_s22 = sand.u32 7, %s1974_s19 }
  0x50   :  { %96 = vst [vmem:[#allocation2 + $0xb0] sm:$0xff] %v2758_v7  ;;  %97 = vst [vmem:[#allocation2 + $0xb8] sm:$0xff] %v2758_v7  ;;  %v2920_v34 = vpack.c.bf16 %v362_v31, %v358_v30  ;;  %v366_v37 = vld [vmem:[#allocation8 + $0x188] sm:$0xff]  ;;  %v2929_v40 = vpack.c.bf16 %v361_v36, %v357_v35  ;;  %v365_v42 = vld [vmem:[#allocation8 + $0x180] sm:$0xff]  ;;  %s2018_s23 = sshll.u32 %s136_s20, 5  ;;  %s149_s24 = sshra.s32 %s1977_s21, 3 }
  0x51   :  { %98 = vst [vmem:[#allocation2 + $0xc0] sm:$0xff] %v2758_v7  ;;  %99 = vst [vmem:[#allocation2 + $0xc8] sm:$0xff] %v2758_v7  ;;  %2043 = vmatpush1.bf16.msra.mxu1 %v2896_v20  ;;  %2107 = vmatpush1.bf16.msra.mxu0 %v2896_v20  ;;  %v370_v38 = vld [vmem:[#allocation8 + $0x1a8] sm:$0xff]  ;;  %v369_v43 = vld [vmem:[#allocation8 + $0x1a0] sm:$0xff]  ;;  %s142_s25 = sadd.s32 %s2018_s23, %s139_s22  ;;  %s152_s26 = sand.u32 7, %s1977_s21 }
  0x52   :  { %100 = vst [vmem:[#allocation2 + $0xd0] sm:$0xff] %v2758_v7  ;;  %101 = vst [vmem:[#allocation2 + $0xd8] sm:$0xff] %v2758_v7  ;;  %2045 = vmatprep.subr.bf16.mxu1 %v2900_v21  ;;  %2109 = vmatprep.subr.bf16.mxu0 %v2900_v21  ;;  %v2933_v41 = vpack.c.bf16 %v370_v38, %v366_v37  ;;  %v115_v44 = vld [vmem:[%s114_s17] ss:$8 sm:$0xf]  ;;  %v2941_v48 = vpack.c.bf16 %v369_v43, %v365_v42  ;;  %s2019_s27 = sshll.u32 %s149_s24, 5 }
  0x53   :  { %102 = vst [vmem:[#allocation2 + $0xe0] sm:$0xff] %v2758_v7  ;;  %103 = vst [vmem:[#allocation2 + $0xe8] sm:$0xff] %v2758_v7  ;;  %v374_v45 = vld [vmem:[#allocation8 + $0x1c8] sm:$0xff]  ;;  %v373_v50 = vld [vmem:[#allocation8 + $0x1c0] sm:$0xff]  ;;  %s143_s28 = scalar_lea.vmem [#allocation7], %s142_s25  ;;  %s155_s29 = sadd.s32 %s2019_s27, %s152_s26 }
  0x54   :  { %104 = vst [vmem:[#allocation2 + $0xf0] sm:$0xff] %v2758_v7  ;;  %105 = vst [vmem:[#allocation2 + $0xf8] sm:$0xff] %v2758_v7  ;;  %v378_v46 = vld [vmem:[#allocation8 + $0x1e8] sm:$0xff]  ;;  %v377_v51 = vld [vmem:[#allocation8 + $0x1e0] sm:$0xff]  ;;  %s156_s30 = scalar_lea.vmem [#allocation7], %s155_s29  ;;  %s162_s0 = sshra.s32 %s1980_s7, 3 }
  0x55   :  { %2047 = vmatpush1.bf16.msra.mxu1 %v2906_v26  ;;  %2111 = vmatpush1.bf16.msra.mxu0 %v2906_v26  ;;  %120 = vst.msk [vmem:[#allocation2] ss:$8 sm:$0xf] %vm2924_vm0, %v115_v44  ;;  %v131_v47 = vld [vmem:[%s130_s18] ss:$8 sm:$0xf]  ;;  %v2945_v49 = vpack.c.bf16 %v378_v46, %v374_v45  ;;  %v2949_v54 = vpack.c.bf16 %v377_v51, %v373_v50 }
  0x56   :  { %2049 = vmatprep.subr.bf16.mxu1 %v2911_v27  ;;  %2113 = vmatprep.subr.bf16.mxu0 %v2911_v27  ;;  %133 = vst.msk [vmem:[#allocation2 + $0x1] ss:$8 sm:$0xf] %vm2924_vm0, %v131_v47  ;;  %v324_v53 = vld [vmem:[#allocation8 + $0x38] sm:$0xff]  ;;  %v319_v56 = vld [vmem:[#allocation8 + $0x10] sm:$0xff]  ;;  %s165_s6 = sand.u32 7, %s1980_s7 }
  0x57   :  { %v2953_v55 = vpack.c.bf16 %v324_v53, %v320_v52  ;;  %v323_v57 = vld [vmem:[#allocation8 + $0x30] sm:$0xff]  ;;  %v328_v58 = vld [vmem:[#allocation8 + $0x58] sm:$0xff]  ;;  %s2020_s8 = sshll.u32 %s162_s0, 5  ;;  %s175_s3 = sshra.s32 %s1983_s1, 3 }
  0x58   :  { %v332_v59 = vld [vmem:[#allocation8 + $0x78] sm:$0xff]  ;;  %v2957_v60 = vpack.c.bf16 %v323_v57, %v319_v56  ;;  %v327_v62 = vld [vmem:[#allocation8 + $0x50] sm:$0xff]  ;;  %s168_s9 = sadd.s32 %s2020_s8, %s165_s6  ;;  %s178_s10 = sand.u32 7, %s1983_s1 }
  0x59   :  { %2051 = vmatpush1.bf16.msra.mxu1 %v2916_v33  ;;  %2115 = vmatpush1.bf16.msra.mxu0 %v2916_v33  ;;  %v2961_v61 = vpack.c.bf16 %v332_v59, %v328_v58  ;;  %v331_v63 = vld [vmem:[#allocation8 + $0x70] sm:$0xff]  ;;  %v336_v0 = vld [vmem:[#allocation8 + $0x98] sm:$0xff]  ;;  %s2021_s11 = sshll.u32 %s175_s3, 5  ;;  %s169_s12 = scalar_lea.vmem [#allocation7], %s168_s9 }
  0x5a   :  { %2053 = vmatprep.subr.bf16.mxu1 %v2920_v34  ;;  %2117 = vmatprep.subr.bf16.mxu0 %v2920_v34  ;;  %v340_v1 = vld [vmem:[#allocation8 + $0xb8] sm:$0xff]  ;;  %v2966_v2 = vpack.c.bf16 %v331_v63, %v327_v62  ;;  %v335_v5 = vld [vmem:[#allocation8 + $0x90] sm:$0xff]  ;;  %s181_s13 = sadd.s32 %s2021_s11, %s178_s10  ;;  %s1986_s15 = sld [smem:[#allocation4 + $0x6]] }
  0x5b   :  { %v2970_v4 = vpack.c.bf16 %v340_v1, %v336_v0  ;;  %v339_v6 = vld [vmem:[#allocation8 + $0xb0] sm:$0xff]  ;;  %v344_v10 = vld [vmem:[#allocation8 + $0xd8] sm:$0xff]  ;;  %s182_s14 = scalar_lea.vmem [#allocation7], %s181_s13  ;;  %s1989_s16 = sld [smem:[#allocation4 + $0x7]] }
  0x5c   :  { %v348_v11 = vld [vmem:[#allocation8 + $0xf8] sm:$0xff]  ;;  %v2973_v12 = vpack.c.bf16 %v339_v6, %v335_v5  ;;  %v343_v16 = vld [vmem:[#allocation8 + $0xd0] sm:$0xff]  ;;  %s1992_s26 = sld [smem:[#allocation4 + $0x8]]  ;;  %s1995_s27 = sld [smem:[#allocation4 + $0x9]] }
  0x5d   :  { %2055 = vmatpush1.bf16.msra.mxu1 %v2929_v40  ;;  %2119 = vmatpush1.bf16.msra.mxu0 %v2929_v40  ;;  %v2976_v13 = vpack.c.bf16 %v348_v11, %v344_v10  ;;  %v347_v17 = vld [vmem:[#allocation8 + $0xf0] sm:$0xff]  ;;  %v352_v18 = vld [vmem:[#allocation8 + $0x118] sm:$0xff]  ;;  %v382_v63 = vld [vmem:[#allocation2 + $0x8] sm:$0xff]  ;;  %s1998_s10 = sld [smem:[#allocation4 + $0xa]]  ;;  %s2001_s11 = sld [smem:[#allocation4 + $0xb]] }
  0x5e   :  { %2057 = vmatprep.subr.bf16.mxu1 %v2933_v41  ;;  %2121 = vmatprep.subr.bf16.mxu0 %v2933_v41  ;;  %v356_v19 = vld [vmem:[#allocation8 + $0x138] sm:$0xff]  ;;  %v2979_v22 = vpack.c.bf16 %v347_v17, %v343_v16  ;;  %v351_v24 = vld [vmem:[#allocation8 + $0x110] sm:$0xff]  ;;  %v381_v0 = vld [vmem:[#allocation2] sm:$0xff] }
  0x5f   :  { %v2982_v23 = vpack.c.bf16 %v356_v19, %v352_v18  ;;  %v355_v25 = vld [vmem:[#allocation8 + $0x130] sm:$0xff]  ;;  %v360_v28 = vld [vmem:[#allocation8 + $0x158] sm:$0xff] }
  0x60   :  { %v364_v29 = vld [vmem:[#allocation8 + $0x178] sm:$0xff]  ;;  %v2985_v30 = vpack.c.bf16 %v355_v25, %v351_v24  ;;  %v359_v35 = vld [vmem:[#allocation8 + $0x150] sm:$0xff]  ;;  %s188_s2 = sshra.s32 %s1986_s15, 3  ;;  %s191_s17 = sand.u32 7, %s1986_s15 }
  0x61   :  { %2059 = vmatpush1.bf16.msra.mxu1 %v2941_v48  ;;  %2123 = vmatpush1.bf16.msra.mxu0 %v2941_v48  ;;  %v2988_v31 = vpack.c.bf16 %v364_v29, %v360_v28  ;;  %v363_v36 = vld [vmem:[#allocation8 + $0x170] sm:$0xff]  ;;  %v368_v37 = vld [vmem:[#allocation8 + $0x198] sm:$0xff]  ;;  %s2022_s18 = sshll.u32 %s188_s2, 5  ;;  %s201_s19 = sshra.s32 %s1989_s16, 3 }
  0x62   :  { %2061 = vmatprep.subr.bf16.mxu1 %v2945_v49  ;;  %2125 = vmatprep.subr.bf16.mxu0 %v2945_v49  ;;  %v372_v38 = vld [vmem:[#allocation8 + $0x1b8] sm:$0xff]  ;;  %v2991_v42 = vpack.c.bf16 %v363_v36, %v359_v35  ;;  %v367_v44 = vld [vmem:[#allocation8 + $0x190] sm:$0xff]  ;;  %s194_s21 = sadd.s32 %s2022_s18, %s191_s17  ;;  %s204_s20 = sand.u32 7, %s1989_s16 }
  0x63   :  { %v2994_v43 = vpack.c.bf16 %v372_v38, %v368_v37  ;;  %v371_v45 = vld [vmem:[#allocation8 + $0x1b0] sm:$0xff]  ;;  %v376_v46 = vld [vmem:[#allocation8 + $0x1d8] sm:$0xff]  ;;  %s2023_s22 = sshll.u32 %s201_s19, 5  ;;  %s195_s23 = scalar_lea.vmem [#allocation7], %s194_s21 }
  0x64   :  { %v380_v47 = vld [vmem:[#allocation8 + $0x1f8] sm:$0xff]  ;;  %v2997_v50 = vpack.c.bf16 %v371_v45, %v367_v44  ;;  %v375_v52 = vld [vmem:[#allocation8 + $0x1d0] sm:$0xff]  ;;  %s207_s24 = sadd.s32 %s2023_s22, %s204_s20  ;;  %s217_s29 = sand.u32 7, %s1992_s26 }
  0x65   :  { %2063 = vmatpush1.bf16.msra.mxu1 %v2949_v54  ;;  %2127 = vmatpush1.bf16.msra.mxu0 %v2949_v54  ;;  %v3000_v51 = vpack.c.bf16 %v380_v47, %v376_v46  ;;  %v379_v53 = vld [vmem:[#allocation8 + $0x1f0] sm:$0xff]  ;;  %v384_v16 = vld [vmem:[#allocation2 + $0x18] sm:$0xff]  ;;  %s208_s25 = scalar_lea.vmem [#allocation7], %s207_s24  ;;  %s227_s7 = sshra.s32 %s1995_s27, 3 }
  0x66   :  { %2065 = vmatprep.subr.bf16.mxu1 %v2953_v55  ;;  %2161 = vmatprep.subr.bf16.mxu0 %v2841_v3  ;;  %v3003_v56 = vpack.c.bf16 %v379_v53, %v375_v52  ;;  %v144_v57 = vld [vmem:[%s143_s28] ss:$8 sm:$0xf]  ;;  %s214_s28 = sshra.s32 %s1992_s26, 3  ;;  %s230_s0 = sand.u32 7, %s1995_s27 }
  0x67   :  { %146 = vst.msk [vmem:[#allocation2 + $0x20] ss:$8 sm:$0xf] %vm2924_vm0, %v144_v57  ;;  %v157_v58 = vld [vmem:[%s156_s30] ss:$8 sm:$0xf] }
  0x68   :  { %450 = vmatmul.mubr.f32.vlgmr.msra.gmra.mrb[0].mxu1 %v2758_v7  ;;  %159 = vst.msk [vmem:[#allocation2 + $0x21] ss:$8 sm:$0xf] %vm2924_vm0, %v157_v58  ;;  %v383_v11 = vld [vmem:[#allocation2 + $0x10] sm:$0xff]  ;;  %s2024_s30 = sshll.u32 %s214_s28, 5  ;;  %s2025_s6 = sshll.u32 %s227_s7, 5 }
  0x69   :  { %2067 = vmatpush1.bf16.msra.mxu1 %v2957_v60  ;;  %520 = vmatprep.mubr.f32.mxu1 %v2758_v7  ;;  %s220_s1 = sadd.s32 %s2024_s30, %s217_s29  ;;  %s233_s3 = sadd.s32 %s2025_s6, %s230_s0 }
  0x6a   :  { %2069 = vmatprep.subr.bf16.mxu1 %v2961_v61  ;;  %s221_s8 = scalar_lea.vmem [#allocation7], %s220_s1  ;;  %s234_s9 = scalar_lea.vmem [#allocation7], %s233_s3 }
  0x6b   :  { %s243_s13 = sand.u32 7, %s1998_s10  ;;  %s253_s15 = sshra.s32 %s2001_s11, 3 }
  0x6c   :  { %s256_s2 = sand.u32 7, %s2001_s11  ;;  %s2027_s17 = sshll.u32 %s253_s15, 5 }
  0x6d   :  { %2071 = vmatpush1.bf16.msra.mxu1 %v2966_v2  ;;  %s259_s19 = sadd.s32 %s2027_s17, %s256_s2  ;;  %s2004_s20 = sld [smem:[#allocation4 + $0xc]] }
  0x6e   :  { %2073 = vmatprep.subr.bf16.mxu1 %v2970_v4  ;;  %s260_s21 = scalar_lea.vmem [#allocation7], %s259_s19  ;;  %s2007_s22 = sld [smem:[#allocation4 + $0xd]] }
  0x6f   :  { %s2010_s0 = sld [smem:[#allocation4 + $0xe]]  ;;  %s2013_s6 = sld [smem:[#allocation4 + $0xf]] }
  0x71   :  { %2075 = vmatpush1.bf16.msra.mxu1 %v2973_v12 }
  0x72   :  { %2077 = vmatprep.subr.bf16.mxu1 %v2976_v13 }
  0x73   :  { %s269_s24 = sand.u32 7, %s2004_s20 }
  0x74   :  { %s279_s26 = sshra.s32 %s2007_s22, 3  ;;  %s282_s28 = sand.u32 7, %s2007_s22 }
  0x75   :  { %2079 = vmatpush1.bf16.msra.mxu1 %v2979_v22  ;;  %s2029_s29 = sshll.u32 %s279_s26, 5  ;;  %s295_s3 = sand.u32 7, %s2010_s0 }
  0x76   :  { %2081 = vmatprep.subr.bf16.mxu1 %v2982_v23  ;;  %s285_s7 = sadd.s32 %s2029_s29, %s282_s28 }
  0x77   :  { %s286_s1 = scalar_lea.vmem [#allocation7], %s285_s7 }
  0x79   :  { %2083 = vmatpush1.bf16.msra.mxu1 %v2985_v30 }
  0x7a   :  { %2085 = vmatprep.subr.bf16.mxu1 %v2988_v31 }
  0x7d   :  { %2087 = vmatpush1.bf16.msra.mxu1 %v2991_v42 }
  0x7e   :  { %2089 = vmatprep.subr.bf16.mxu1 %v2994_v43 }
  0x81   :  { %2091 = vmatpush1.bf16.msra.mxu1 %v2997_v50 }
  0x82   :  { %2093 = vmatprep.subr.bf16.mxu1 %v3000_v51 }
  0x85   :  { %2095 = vmatpush1.bf16.msra.mxu1 %v3003_v56 }
  0x86   :  { %2129 = vmatprep.subr.bf16.mxu1 %v2953_v55 }
  0x88   :  { %521 = vmatmul.mubr.f32.vlgmr.msra.gmra.mrb[2].mxu1 %v2758_v7 }
  0x89   :  { %2131 = vmatpush1.bf16.msra.mxu1 %v2957_v60  ;;  %689 = vmatprep.mubr.f32.mxu1 %v2758_v7 }
  0x8a   :  { %2133 = vmatprep.subr.bf16.mxu1 %v2961_v61 }
  0x8d   :  { %2135 = vmatpush1.bf16.msra.mxu1 %v2966_v2 }
  0x8e   :  { %2137 = vmatprep.subr.bf16.mxu1 %v2970_v4 }
  0x91   :  { %2139 = vmatpush1.bf16.msra.mxu1 %v2973_v12 }
  0x92   :  { %2141 = vmatprep.subr.bf16.mxu1 %v2976_v13 }
  0x95   :  { %2143 = vmatpush1.bf16.msra.mxu1 %v2979_v22 }
  0x96   :  { %2145 = vmatprep.subr.bf16.mxu1 %v2982_v23 }
  0x99   :  { %2147 = vmatpush1.bf16.msra.mxu1 %v2985_v30 }
  0x9a   :  { %2149 = vmatprep.subr.bf16.mxu1 %v2988_v31 }
  0x9d   :  { %2151 = vmatpush1.bf16.msra.mxu1 %v2991_v42 }
  0x9e   :  { %2153 = vmatprep.subr.bf16.mxu1 %v2994_v43 }
  0xa1   :  { %2155 = vmatpush1.bf16.msra.mxu1 %v2997_v50 }
  0xa2   :  { %2157 = vmatprep.subr.bf16.mxu1 %v3000_v51 }
  0xa5   :  { %2159 = vmatpush1.bf16.msra.mxu1 %v3003_v56 }
  0xa6   :  { %2193 = vmatprep.subr.bf16.mxu1 %v2953_v55 }
 0x13b   :  { %v451_v59 = vpop.f32.mrb[0].mxu1 }
 0x13c   :  { %v453_v62 = vpop.f32.mrb[1].mxu1  ;;  %v527_v5 = vadd.f32 %v451_v59, %v381_v0  ;;  %v550_v0 = vld [vmem:[#allocation2 + $0x20] sm:$0xff] }
 0x13d   :  { %v528_v1 = vadd.f32 %v453_v62, %v382_v63  ;;  %v170_v62 = vld [vmem:[%s169_s12] ss:$8 sm:$0xf]  ;;  %s240_s12 = sshra.s32 %s1998_s10, 3  ;;  %s305_s10 = sshra.s32 %s2013_s6, 3 }
 0x13e   :  { %v531_v10 = vmul.f32 0.5, %v527_v5  ;;  %172 = vst.msk [vmem:[#allocation2 + $0x40] ss:$8 sm:$0xf] %vm2924_vm0, %v170_v62 }
 0x13f   :  { %v535_v6 = vmul.f32 0.5, %v528_v1  ;;  %v183_v63 = vld [vmem:[%s182_s14] ss:$8 sm:$0xf]  ;;  %s2026_s14 = sshll.u32 %s240_s12, 5  ;;  %s308_s12 = sand.u32 7, %s2013_s6 }
 0x140   :  { %185 = vst.msk [vmem:[#allocation2 + $0x41] ss:$8 sm:$0xf] %vm2924_vm0, %v183_v63  ;;  %v551_v1 = vld [vmem:[#allocation2 + $0x28] sm:$0xff]  ;;  %s246_s16 = sadd.s32 %s2026_s14, %s243_s13  ;;  %s2031_s13 = sshll.u32 %s305_s10, 5 }
 0x141   :  { %2585 = vtanh.f32 %v535_v6  ;;  %s247_s18 = scalar_lea.vmem [#allocation7], %s246_s16  ;;  %s311_s15 = sadd.s32 %s2031_s13, %s308_s12 }
 0x142   :  { %2587 = vtanh.f32 %v531_v10  ;;  %s312_s16 = scalar_lea.vmem [#allocation7], %s311_s15 }
 0x14b   :  { %v2586_v25 = vpop.eup %2585 }
 0x14c   :  { %v2588_v28 = vpop.eup %2587  ;;  %v537_v29 = vmul.f32 0.5, %v2586_v25 }
 0x14d   :  { %v533_v36 = vmul.f32 0.5, %v2588_v28  ;;  %v553_v28 = vld [vmem:[#allocation2 + $0x38] sm:$0xff] }
 0x14e   :  { %v538_v37 = vadd.f32 0.5, %v537_v29 }
 0x14f   :  { %v534_v38 = vadd.f32 0.5, %v533_v36 }
 0x150   :  { %v544_v45 = vmul.f32 0.0, %v538_v37 }
 0x15b   :  { %v522_v17 = vpop.f32.mrb[2].mxu1 }
 0x15c   :  { %v529_v18 = vadd.f32 %v522_v17, %v383_v11  ;;  %v524_v19 = vpop.f32.mrb[3].mxu1  ;;  %v552_v17 = vld [vmem:[#allocation2 + $0x30] sm:$0xff] }
 0x15d   :  { %v530_v24 = vadd.f32 %v524_v19, %v384_v16 }
 0x15e   :  { %2589 = vtanh.f32 %v529_v18 }
 0x15f   :  { %v540_v35 = vmul.f32 0.5, %v530_v24 }
 0x161   :  { %2591 = vtanh.f32 %v540_v35 }
 0x168   :  { %v2590_v44 = vpop.eup %2589 }
 0x169   :  { %v545_v46 = vmul.f32 %v2590_v44, %v534_v38 }
 0x16b   :  { %v3030_v47 = vadd.f32 %v545_v46, %v544_v45  ;;  %v2592_v52 = vpop.eup %2591 }
 0x16c   :  { %v542_v53 = vmul.f32 0.5, %v2592_v52 }
 0x16d   :  { %2593 = vtanh.f32 %v3030_v47 }
 0x16e   :  { %v543_v57 = vadd.f32 0.5, %v542_v53 }
 0x177   :  { %v2594_v58 = vpop.eup %2593 }
 0x178   :  { %v3033_v59 = vmul.f32 %v2594_v58, %v543_v57 }
 0x17a   :  { %619 = vmatmul.mubr.f32.vlgmr.msra.gmra.mrb[0].mxu0 %v3033_v59  ;;  %690 = vmatmul.mubr.f32.vlgmr.msra.gmra.mrb[4].mxu1 %v3033_v59 }
 0x17b   :  { %2163 = vmatpush1.bf16.msra.mxu0 %v2879_v8  ;;  %2195 = vmatpush1.bf16.msra.mxu1 %v2957_v60 }
 0x17c   :  { %2165 = vmatprep.subr.bf16.mxu0 %v2881_v9  ;;  %2197 = vmatprep.subr.bf16.mxu1 %v2961_v61 }
 0x17d   :  { %787 = vmatprep.mubr.f32.mxu0 %v2758_v7  ;;  %858 = vmatprep.mubr.f32.mxu1 %v2758_v7 }
 0x17f   :  { %2167 = vmatpush1.bf16.msra.mxu0 %v2888_v14  ;;  %2199 = vmatpush1.bf16.msra.mxu1 %v2966_v2 }
 0x180   :  { %2169 = vmatprep.subr.bf16.mxu0 %v2892_v15  ;;  %2201 = vmatprep.subr.bf16.mxu1 %v2970_v4 }
 0x183   :  { %2171 = vmatpush1.bf16.msra.mxu0 %v2896_v20  ;;  %2203 = vmatpush1.bf16.msra.mxu1 %v2973_v12 }
 0x184   :  { %2173 = vmatprep.subr.bf16.mxu0 %v2900_v21  ;;  %2205 = vmatprep.subr.bf16.mxu1 %v2976_v13 }
 0x187   :  { %2175 = vmatpush1.bf16.msra.mxu0 %v2906_v26  ;;  %2207 = vmatpush1.bf16.msra.mxu1 %v2979_v22 }
 0x188   :  { %2177 = vmatprep.subr.bf16.mxu0 %v2911_v27  ;;  %2209 = vmatprep.subr.bf16.mxu1 %v2982_v23 }
 0x18b   :  { %2179 = vmatpush1.bf16.msra.mxu0 %v2916_v33  ;;  %2211 = vmatpush1.bf16.msra.mxu1 %v2985_v30 }
 0x18c   :  { %2181 = vmatprep.subr.bf16.mxu0 %v2920_v34  ;;  %2213 = vmatprep.subr.bf16.mxu1 %v2988_v31 }
 0x18f   :  { %2183 = vmatpush1.bf16.msra.mxu0 %v2929_v40  ;;  %2215 = vmatpush1.bf16.msra.mxu1 %v2991_v42 }
 0x190   :  { %2185 = vmatprep.subr.bf16.mxu0 %v2933_v41  ;;  %2217 = vmatprep.subr.bf16.mxu1 %v2994_v43 }
 0x193   :  { %2187 = vmatpush1.bf16.msra.mxu0 %v2941_v48  ;;  %2219 = vmatpush1.bf16.msra.mxu1 %v2997_v50 }
 0x194   :  { %2189 = vmatprep.subr.bf16.mxu0 %v2945_v49  ;;  %2221 = vmatprep.subr.bf16.mxu1 %v3000_v51 }
 0x197   :  { %2191 = vmatpush1.bf16.msra.mxu0 %v2949_v54  ;;  %2223 = vmatpush1.bf16.msra.mxu1 %v3003_v56 }
 0x198   :  { %2225 = vmatprep.subr.bf16.mxu0 %v2841_v3  ;;  %2257 = vmatprep.subr.bf16.mxu1 %v2953_v55 }
 0x24d   :  { %v620_v5 = vpop.f32.mrb[0].mxu0  ;;  %v691_v6 = vpop.f32.mrb[4].mxu1 }
 0x24e   :  { %v696_v10 = vadd.f32 %v620_v5, %v550_v0  ;;  %v622_v11 = vpop.f32.mrb[1].mxu0  ;;  %v693_v16 = vpop.f32.mrb[5].mxu1  ;;  %v698_v25 = vadd.f32 %v691_v6, %v552_v17  ;;  %v209_v6 = vld [vmem:[%s208_s25] ss:$8 sm:$0xf] }
 0x24f   :  { %v697_v18 = vadd.f32 %v622_v11, %v551_v1  ;;  %v699_v29 = vadd.f32 %v693_v16, %v553_v28  ;;  %211 = vst.msk [vmem:[#allocation2 + $0x61] ss:$8 sm:$0xf] %vm2924_vm0, %v209_v6  ;;  %v720_v11 = vld [vmem:[#allocation2 + $0x48] sm:$0xff] }
 0x250   :  { %v700_v19 = vmul.f32 0.5, %v696_v10  ;;  %v719_v10 = vld [vmem:[#allocation2 + $0x40] sm:$0xff] }
 0x251   :  { %v704_v24 = vmul.f32 0.5, %v697_v18  ;;  %v709_v35 = vmul.f32 0.5, %v699_v29 }
 0x252   :  { %2595 = vtanh.f32 %v700_v19 }
 0x253   :  { %2597 = vtanh.f32 %v704_v24 }
 0x254   :  { %2599 = vtanh.f32 %v698_v25  ;;  %v721_v25 = vld [vmem:[#allocation2 + $0x50] sm:$0xff] }
 0x255   :  { %2601 = vtanh.f32 %v709_v35 }
 0x25c   :  { %v2596_v36 = vpop.eup %2595 }
 0x25d   :  { %v2598_v37 = vpop.eup %2597  ;;  %v702_v38 = vmul.f32 0.5, %v2596_v36 }
 0x25e   :  { %v706_v44 = vmul.f32 0.5, %v2598_v37  ;;  %v2600_v46 = vpop.eup %2599  ;;  %v722_v37 = vld [vmem:[#allocation2 + $0x58] sm:$0xff] }
 0x25f   :  { %v703_v45 = vadd.f32 0.5, %v702_v38  ;;  %v2602_v62 = vpop.eup %2601 }
 0x260   :  { %v707_v52 = vadd.f32 0.5, %v706_v44  ;;  %v711_v63 = vmul.f32 0.5, %v2602_v62 }
 0x261   :  { %v714_v53 = vmul.f32 %v2600_v46, %v703_v45 }
 0x262   :  { %v713_v57 = vmul.f32 %v707_v52, %v3030_v47  ;;  %v712_v0 = vadd.f32 0.5, %v711_v63  ;;  %v196_v47 = vld [vmem:[%s195_s23] ss:$8 sm:$0xf]  ;;  %s266_s23 = sshra.s32 %s2004_s20, 3 }
 0x263   :  { %198 = vst.msk [vmem:[#allocation2 + $0x60] ss:$8 sm:$0xf] %vm2924_vm0, %v196_v47  ;;  %s2028_s25 = sshll.u32 %s266_s23, 5 }
 0x264   :  { %v3076_v58 = vadd.f32 %v714_v53, %v713_v57  ;;  %s272_s27 = sadd.s32 %s2028_s25, %s269_s24 }
 0x265   :  { %s273_s30 = scalar_lea.vmem [#allocation7], %s272_s27 }
 0x266   :  { %2603 = vtanh.f32 %v3076_v58 }
 0x270   :  { %v2604_v1 = vpop.eup %2603 }
 0x271   :  { %v3079_v5 = vmul.f32 %v2604_v1, %v712_v0 }
 0x273   :  { %788 = vmatmul.mubr.f32.vlgmr.msra.gmra.mrb[2].mxu0 %v3079_v5  ;;  %859 = vmatmul.mubr.f32.vlgmr.msra.gmra.mrb[6].mxu1 %v3079_v5 }
 0x274   :  { %2227 = vmatpush1.bf16.msra.mxu0 %v2879_v8  ;;  %2259 = vmatpush1.bf16.msra.mxu1 %v2957_v60 }
 0x275   :  { %2229 = vmatprep.subr.bf16.mxu0 %v2881_v9  ;;  %2261 = vmatprep.subr.bf16.mxu1 %v2961_v61 }
 0x276   :  { %956 = vmatprep.mubr.f32.mxu0 %v2758_v7  ;;  %1027 = vmatprep.mubr.f32.mxu1 %v2758_v7 }
 0x278   :  { %2231 = vmatpush1.bf16.msra.mxu0 %v2888_v14  ;;  %2263 = vmatpush1.bf16.msra.mxu1 %v2966_v2 }
 0x279   :  { %2233 = vmatprep.subr.bf16.mxu0 %v2892_v15  ;;  %2265 = vmatprep.subr.bf16.mxu1 %v2970_v4 }
 0x27c   :  { %2235 = vmatpush1.bf16.msra.mxu0 %v2896_v20  ;;  %2267 = vmatpush1.bf16.msra.mxu1 %v2973_v12 }
 0x27d   :  { %2237 = vmatprep.subr.bf16.mxu0 %v2900_v21  ;;  %2269 = vmatprep.subr.bf16.mxu1 %v2976_v13 }
 0x280   :  { %2239 = vmatpush1.bf16.msra.mxu0 %v2906_v26  ;;  %2271 = vmatpush1.bf16.msra.mxu1 %v2979_v22 }
 0x281   :  { %2241 = vmatprep.subr.bf16.mxu0 %v2911_v27  ;;  %2273 = vmatprep.subr.bf16.mxu1 %v2982_v23 }
 0x284   :  { %2243 = vmatpush1.bf16.msra.mxu0 %v2916_v33  ;;  %2275 = vmatpush1.bf16.msra.mxu1 %v2985_v30 }
 0x285   :  { %2245 = vmatprep.subr.bf16.mxu0 %v2920_v34  ;;  %2277 = vmatprep.subr.bf16.mxu1 %v2988_v31 }
 0x288   :  { %2247 = vmatpush1.bf16.msra.mxu0 %v2929_v40  ;;  %2279 = vmatpush1.bf16.msra.mxu1 %v2991_v42 }
 0x289   :  { %2249 = vmatprep.subr.bf16.mxu0 %v2933_v41  ;;  %2281 = vmatprep.subr.bf16.mxu1 %v2994_v43 }
 0x28c   :  { %2251 = vmatpush1.bf16.msra.mxu0 %v2941_v48  ;;  %2283 = vmatpush1.bf16.msra.mxu1 %v2997_v50 }
 0x28d   :  { %2253 = vmatprep.subr.bf16.mxu0 %v2945_v49  ;;  %2285 = vmatprep.subr.bf16.mxu1 %v3000_v51 }
 0x290   :  { %2255 = vmatpush1.bf16.msra.mxu0 %v2949_v54  ;;  %2287 = vmatpush1.bf16.msra.mxu1 %v3003_v56 }
 0x291   :  { %2289 = vmatprep.subr.bf16.mxu0 %v2841_v3  ;;  %2321 = vmatprep.subr.bf16.mxu1 %v2953_v55 }
 0x346   :  { %v789_v16 = vpop.f32.mrb[2].mxu0  ;;  %v860_v17 = vpop.f32.mrb[6].mxu1 }
 0x347   :  { %v865_v18 = vadd.f32 %v789_v16, %v719_v10  ;;  %v791_v19 = vpop.f32.mrb[3].mxu0  ;;  %v862_v24 = vpop.f32.mrb[7].mxu1  ;;  %v867_v36 = vadd.f32 %v860_v17, %v721_v25 }
 0x348   :  { %v866_v28 = vadd.f32 %v791_v19, %v720_v11  ;;  %v868_v38 = vadd.f32 %v862_v24, %v722_v37  ;;  %v888_v19 = vld [vmem:[#allocation2 + $0x60] sm:$0xff]  ;;  %v889_v24 = vld [vmem:[#allocation2 + $0x68] sm:$0xff]  ;;  %v890_v37 = vld [vmem:[#allocation2 + $0x70] sm:$0xff] }
 0x349   :  { %v869_v29 = vmul.f32 0.5, %v865_v18  ;;  %v235_v18 = vld [vmem:[%s234_s9] ss:$8 sm:$0xf] }
 0x34a   :  { %v873_v35 = vmul.f32 0.5, %v866_v28  ;;  %v878_v44 = vmul.f32 0.5, %v868_v38  ;;  %237 = vst.msk [vmem:[#allocation2 + $0x81] ss:$8 sm:$0xf] %vm2924_vm0, %v235_v18 }
 0x34b   :  { %2605 = vtanh.f32 %v869_v29 }
 0x34c   :  { %2607 = vtanh.f32 %v873_v35 }
 0x34d   :  { %2609 = vtanh.f32 %v867_v36 }
 0x34e   :  { %2611 = vtanh.f32 %v878_v44 }
 0x355   :  { %v2606_v45 = vpop.eup %2605 }
 0x356   :  { %v2608_v46 = vpop.eup %2607  ;;  %v871_v52 = vmul.f32 0.5, %v2606_v45 }
 0x357   :  { %v875_v53 = vmul.f32 0.5, %v2608_v46  ;;  %v2610_v62 = vpop.eup %2609 }
 0x358   :  { %v872_v57 = vadd.f32 0.5, %v871_v52  ;;  %v2612_v6 = vpop.eup %2611  ;;  %v891_v52 = vld [vmem:[#allocation2 + $0x78] sm:$0xff] }
 0x359   :  { %v876_v63 = vadd.f32 0.5, %v875_v53  ;;  %v880_v10 = vmul.f32 0.5, %v2612_v6 }
 0x35a   :  { %v883_v0 = vmul.f32 %v2610_v62, %v872_v57 }
 0x35b   :  { %v882_v1 = vmul.f32 %v876_v63, %v3076_v58  ;;  %v881_v11 = vadd.f32 0.5, %v880_v10  ;;  %v222_v58 = vld [vmem:[%s221_s8] ss:$8 sm:$0xf]  ;;  %s292_s8 = sshra.s32 %s2010_s0, 3 }
 0x35c   :  { %224 = vst.msk [vmem:[#allocation2 + $0x80] ss:$8 sm:$0xf] %vm2924_vm0, %v222_v58  ;;  %s2030_s9 = sshll.u32 %s292_s8, 5 }
 0x35d   :  { %v3122_v47 = vadd.f32 %v883_v0, %v882_v1  ;;  %s298_s11 = sadd.s32 %s2030_s9, %s295_s3 }
 0x35e   :  { %s299_s14 = scalar_lea.vmem [#allocation7], %s298_s11 }
 0x35f   :  { %2613 = vtanh.f32 %v3122_v47 }
 0x369   :  { %v2614_v16 = vpop.eup %2613 }
 0x36a   :  { %v3125_v17 = vmul.f32 %v2614_v16, %v881_v11 }
 0x36c   :  { %957 = vmatmul.mubr.f32.vlgmr.msra.gmra.mrb[4].mxu0 %v3125_v17  ;;  %1028 = vmatmul.mubr.f32.vlgmr.msra.gmra.mrb[8].mxu1 %v3125_v17 }
 0x36d   :  { %2291 = vmatpush1.bf16.msra.mxu0 %v2879_v8  ;;  %2323 = vmatpush1.bf16.msra.mxu1 %v2957_v60 }
 0x36e   :  { %2293 = vmatprep.subr.bf16.mxu0 %v2881_v9  ;;  %2325 = vmatprep.subr.bf16.mxu1 %v2961_v61 }
 0x36f   :  { %1125 = vmatprep.mubr.f32.mxu0 %v2758_v7  ;;  %1196 = vmatprep.mubr.f32.mxu1 %v2758_v7 }
 0x371   :  { %2295 = vmatpush1.bf16.msra.mxu0 %v2888_v14  ;;  %2327 = vmatpush1.bf16.msra.mxu1 %v2966_v2 }
 0x372   :  { %2297 = vmatprep.subr.bf16.mxu0 %v2892_v15  ;;  %2329 = vmatprep.subr.bf16.mxu1 %v2970_v4 }
 0x375   :  { %2299 = vmatpush1.bf16.msra.mxu0 %v2896_v20  ;;  %2331 = vmatpush1.bf16.msra.mxu1 %v2973_v12 }
 0x376   :  { %2301 = vmatprep.subr.bf16.mxu0 %v2900_v21  ;;  %2333 = vmatprep.subr.bf16.mxu1 %v2976_v13 }
 0x379   :  { %2303 = vmatpush1.bf16.msra.mxu0 %v2906_v26  ;;  %2335 = vmatpush1.bf16.msra.mxu1 %v2979_v22 }
 0x37a   :  { %2305 = vmatprep.subr.bf16.mxu0 %v2911_v27  ;;  %2337 = vmatprep.subr.bf16.mxu1 %v2982_v23 }
 0x37d   :  { %2307 = vmatpush1.bf16.msra.mxu0 %v2916_v33  ;;  %2339 = vmatpush1.bf16.msra.mxu1 %v2985_v30 }
 0x37e   :  { %2309 = vmatprep.subr.bf16.mxu0 %v2920_v34  ;;  %2341 = vmatprep.subr.bf16.mxu1 %v2988_v31 }
 0x381   :  { %2311 = vmatpush1.bf16.msra.mxu0 %v2929_v40  ;;  %2343 = vmatpush1.bf16.msra.mxu1 %v2991_v42 }
 0x382   :  { %2313 = vmatprep.subr.bf16.mxu0 %v2933_v41  ;;  %2345 = vmatprep.subr.bf16.mxu1 %v2994_v43 }
 0x385   :  { %2315 = vmatpush1.bf16.msra.mxu0 %v2941_v48  ;;  %2347 = vmatpush1.bf16.msra.mxu1 %v2997_v50 }
 0x386   :  { %2317 = vmatprep.subr.bf16.mxu0 %v2945_v49  ;;  %2349 = vmatprep.subr.bf16.mxu1 %v3000_v51 }
 0x389   :  { %2319 = vmatpush1.bf16.msra.mxu0 %v2949_v54  ;;  %2351 = vmatpush1.bf16.msra.mxu1 %v3003_v56 }
 0x38a   :  { %2353 = vmatprep.subr.bf16.mxu0 %v2841_v3  ;;  %2385 = vmatprep.subr.bf16.mxu1 %v2953_v55 }
 0x43f   :  { %v958_v25 = vpop.f32.mrb[4].mxu0  ;;  %v1029_v28 = vpop.f32.mrb[8].mxu1 }
 0x440   :  { %v1034_v29 = vadd.f32 %v958_v25, %v888_v19  ;;  %v960_v35 = vpop.f32.mrb[5].mxu0  ;;  %v1031_v36 = vpop.f32.mrb[9].mxu1  ;;  %v1036_v46 = vadd.f32 %v1029_v28, %v890_v37 }
 0x441   :  { %v1035_v38 = vadd.f32 %v960_v35, %v889_v24  ;;  %v1037_v53 = vadd.f32 %v1031_v36, %v891_v52  ;;  %v1057_v35 = vld [vmem:[#allocation2 + $0x80] sm:$0xff]  ;;  %v1058_v36 = vld [vmem:[#allocation2 + $0x88] sm:$0xff]  ;;  %v1059_v52 = vld [vmem:[#allocation2 + $0x90] sm:$0xff] }
 0x442   :  { %v1038_v44 = vmul.f32 0.5, %v1034_v29 }
 0x443   :  { %v1042_v45 = vmul.f32 0.5, %v1035_v38  ;;  %v1047_v57 = vmul.f32 0.5, %v1037_v53 }
 0x444   :  { %2615 = vtanh.f32 %v1038_v44 }
 0x445   :  { %2617 = vtanh.f32 %v1042_v45 }
 0x446   :  { %2619 = vtanh.f32 %v1036_v46 }
 0x447   :  { %2621 = vtanh.f32 %v1047_v57 }
 0x44e   :  { %v2616_v62 = vpop.eup %2615 }
 0x44f   :  { %v2618_v63 = vpop.eup %2617  ;;  %v1040_v0 = vmul.f32 0.5, %v2616_v62 }
 0x450   :  { %v1044_v1 = vmul.f32 0.5, %v2618_v63  ;;  %v2620_v10 = vpop.eup %2619 }
 0x451   :  { %v1041_v6 = vadd.f32 0.5, %v1040_v0  ;;  %v2622_v19 = vpop.eup %2621  ;;  %v1060_v0 = vld [vmem:[#allocation2 + $0x98] sm:$0xff] }
 0x452   :  { %v1045_v11 = vadd.f32 0.5, %v1044_v1  ;;  %v1049_v24 = vmul.f32 0.5, %v2622_v19 }
 0x453   :  { %v1052_v16 = vmul.f32 %v2620_v10, %v1041_v6 }
 0x454   :  { %v1051_v58 = vmul.f32 %v1045_v11, %v3122_v47  ;;  %v1050_v25 = vadd.f32 0.5, %v1049_v24  ;;  %v261_v47 = vld [vmem:[%s260_s21] ss:$8 sm:$0xf] }
 0x455   :  { %263 = vst.msk [vmem:[#allocation2 + $0xa1] ss:$8 sm:$0xf] %vm2924_vm0, %v261_v47 }
 0x456   :  { %v3168_v18 = vadd.f32 %v1052_v16, %v1051_v58 }
 0x458   :  { %2623 = vtanh.f32 %v3168_v18 }
 0x462   :  { %v2624_v28 = vpop.eup %2623 }
 0x463   :  { %v3171_v29 = vmul.f32 %v2624_v28, %v1050_v25 }
 0x465   :  { %1126 = vmatmul.mubr.f32.vlgmr.msra.gmra.mrb[6].mxu0 %v3171_v29  ;;  %1197 = vmatmul.mubr.f32.vlgmr.msra.gmra.mrb[10].mxu1 %v3171_v29 }
 0x466   :  { %2355 = vmatpush1.bf16.msra.mxu0 %v2879_v8  ;;  %2387 = vmatpush1.bf16.msra.mxu1 %v2957_v60 }
 0x467   :  { %2357 = vmatprep.subr.bf16.mxu0 %v2881_v9  ;;  %2389 = vmatprep.subr.bf16.mxu1 %v2961_v61 }
 0x468   :  { %1294 = vmatprep.mubr.f32.mxu0 %v2758_v7  ;;  %1365 = vmatprep.mubr.f32.mxu1 %v2758_v7  ;;  %v248_v7 = vld [vmem:[%s247_s18] ss:$8 sm:$0xf] }
 0x469   :  { %250 = vst.msk [vmem:[#allocation2 + $0xa0] ss:$8 sm:$0xf] %vm2924_vm0, %v248_v7 }
 0x46a   :  { %2359 = vmatpush1.bf16.msra.mxu0 %v2888_v14  ;;  %2391 = vmatpush1.bf16.msra.mxu1 %v2966_v2 }
 0x46b   :  { %2361 = vmatprep.subr.bf16.mxu0 %v2892_v15  ;;  %2393 = vmatprep.subr.bf16.mxu1 %v2970_v4 }
 0x46e   :  { %2363 = vmatpush1.bf16.msra.mxu0 %v2896_v20  ;;  %2395 = vmatpush1.bf16.msra.mxu1 %v2973_v12 }
 0x46f   :  { %2365 = vmatprep.subr.bf16.mxu0 %v2900_v21  ;;  %2397 = vmatprep.subr.bf16.mxu1 %v2976_v13 }
 0x472   :  { %2367 = vmatpush1.bf16.msra.mxu0 %v2906_v26  ;;  %2399 = vmatpush1.bf16.msra.mxu1 %v2979_v22 }
 0x473   :  { %2369 = vmatprep.subr.bf16.mxu0 %v2911_v27  ;;  %2401 = vmatprep.subr.bf16.mxu1 %v2982_v23 }
 0x476   :  { %2371 = vmatpush1.bf16.msra.mxu0 %v2916_v33  ;;  %2403 = vmatpush1.bf16.msra.mxu1 %v2985_v30 }
 0x477   :  { %2373 = vmatprep.subr.bf16.mxu0 %v2920_v34  ;;  %2405 = vmatprep.subr.bf16.mxu1 %v2988_v31 }
 0x47a   :  { %2375 = vmatpush1.bf16.msra.mxu0 %v2929_v40  ;;  %2407 = vmatpush1.bf16.msra.mxu1 %v2991_v42 }
 0x47b   :  { %2377 = vmatprep.subr.bf16.mxu0 %v2933_v41  ;;  %2409 = vmatprep.subr.bf16.mxu1 %v2994_v43 }
 0x47e   :  { %2379 = vmatpush1.bf16.msra.mxu0 %v2941_v48  ;;  %2411 = vmatpush1.bf16.msra.mxu1 %v2997_v50 }
 0x47f   :  { %2381 = vmatprep.subr.bf16.mxu0 %v2945_v49  ;;  %2413 = vmatprep.subr.bf16.mxu1 %v3000_v51 }
 0x482   :  { %2383 = vmatpush1.bf16.msra.mxu0 %v2949_v54  ;;  %2415 = vmatpush1.bf16.msra.mxu1 %v3003_v56 }
 0x483   :  { %2417 = vmatprep.subr.bf16.mxu0 %v2841_v3  ;;  %2449 = vmatprep.subr.bf16.mxu1 %v2953_v55 }
 0x538   :  { %v1127_v37 = vpop.f32.mrb[6].mxu0  ;;  %v1198_v38 = vpop.f32.mrb[10].mxu1 }
 0x539   :  { %v1203_v44 = vadd.f32 %v1127_v37, %v1057_v35  ;;  %v1129_v45 = vpop.f32.mrb[7].mxu0  ;;  %v1200_v46 = vpop.f32.mrb[11].mxu1  ;;  %v1205_v63 = vadd.f32 %v1198_v38, %v1059_v52 }
 0x53a   :  { %v1204_v53 = vadd.f32 %v1129_v45, %v1058_v36  ;;  %v1206_v1 = vadd.f32 %v1200_v46, %v1060_v0  ;;  %v274_v45 = vld [vmem:[%s273_s30] ss:$8 sm:$0xf] }
 0x53b   :  { %v1207_v57 = vmul.f32 0.5, %v1203_v44  ;;  %v287_v46 = vld [vmem:[%s286_s1] ss:$8 sm:$0xf] }
 0x53c   :  { %v1211_v62 = vmul.f32 0.5, %v1204_v53  ;;  %v1216_v6 = vmul.f32 0.5, %v1206_v1  ;;  %v1228_v0 = vld [vmem:[#allocation2 + $0xb0] sm:$0xff] }
 0x53d   :  { %2625 = vtanh.f32 %v1207_v57 }
 0x53e   :  { %2627 = vtanh.f32 %v1211_v62 }
 0x53f   :  { %2629 = vtanh.f32 %v1205_v63 }
 0x540   :  { %2631 = vtanh.f32 %v1216_v6 }
 0x547   :  { %v2626_v10 = vpop.eup %2625 }
 0x548   :  { %v2628_v11 = vpop.eup %2627  ;;  %v1209_v16 = vmul.f32 0.5, %v2626_v10 }
 0x549   :  { %v1213_v58 = vmul.f32 0.5, %v2628_v11  ;;  %v2630_v24 = vpop.eup %2629 }
 0x54a   :  { %v1210_v19 = vadd.f32 0.5, %v1209_v16  ;;  %v2632_v35 = vpop.eup %2631  ;;  %v1229_v16 = vld [vmem:[#allocation2 + $0xb8] sm:$0xff] }
 0x54b   :  { %v1214_v25 = vadd.f32 0.5, %v1213_v58  ;;  %v1218_v36 = vmul.f32 0.5, %v2632_v35 }
 0x54c   :  { %v1221_v28 = vmul.f32 %v2630_v24, %v1210_v19 }
 0x54d   :  { %v1220_v7 = vmul.f32 %v1214_v25, %v3168_v18  ;;  %v1219_v37 = vadd.f32 0.5, %v1218_v36  ;;  %v3225_v18 = vld [vmem:[#allocation2 + $0xc0] sm:$0xff] }
 0x54e   :  { %276 = vst.msk [vmem:[#allocation2 + $0xc0] ss:$8 sm:$0xf] %vm2924_vm0, %v274_v45  ;;  %289 = vst.msk [vmem:[#allocation2 + $0xc1] ss:$8 sm:$0xf] %vm2924_vm0, %v287_v46 }
 0x54f   :  { %v3214_v47 = vadd.f32 %v1221_v28, %v1220_v7 }
 0x551   :  { %2633 = vtanh.f32 %v3214_v47 }
 0x55b   :  { %v2634_v38 = vpop.eup %2633 }
 0x55c   :  { %v3217_v44 = vmul.f32 %v2634_v38, %v1219_v37 }
 0x55e   :  { %1295 = vmatmul.mubr.f32.vlgmr.msra.gmra.mrb[8].mxu0 %v3217_v44  ;;  %1366 = vmatmul.mubr.f32.vlgmr.msra.gmra.mrb[12].mxu1 %v3217_v44 }
 0x55f   :  { %2419 = vmatpush1.bf16.msra.mxu0 %v2879_v8  ;;  %2451 = vmatpush1.bf16.msra.mxu1 %v2957_v60 }
 0x560   :  { %2421 = vmatprep.subr.bf16.mxu0 %v2881_v9  ;;  %2453 = vmatprep.subr.bf16.mxu1 %v2961_v61 }
 0x561   :  { %1463 = vmatprep.mubr.f32.mxu0 %v3225_v18  ;;  %1534 = vmatprep.mubr.f32.mxu1 %v3225_v18 }
 0x563   :  { %2423 = vmatpush1.bf16.msra.mxu0 %v2888_v14  ;;  %2455 = vmatpush1.bf16.msra.mxu1 %v2966_v2 }
 0x564   :  { %2425 = vmatprep.subr.bf16.mxu0 %v2892_v15  ;;  %2457 = vmatprep.subr.bf16.mxu1 %v2970_v4 }
 0x567   :  { %2427 = vmatpush1.bf16.msra.mxu0 %v2896_v20  ;;  %2459 = vmatpush1.bf16.msra.mxu1 %v2973_v12 }
 0x568   :  { %2429 = vmatprep.subr.bf16.mxu0 %v2900_v21  ;;  %2461 = vmatprep.subr.bf16.mxu1 %v2976_v13 }
 0x56b   :  { %2431 = vmatpush1.bf16.msra.mxu0 %v2906_v26  ;;  %2463 = vmatpush1.bf16.msra.mxu1 %v2979_v22 }
 0x56c   :  { %2433 = vmatprep.subr.bf16.mxu0 %v2911_v27  ;;  %2465 = vmatprep.subr.bf16.mxu1 %v2982_v23 }
 0x56f   :  { %2435 = vmatpush1.bf16.msra.mxu0 %v2916_v33  ;;  %2467 = vmatpush1.bf16.msra.mxu1 %v2985_v30 }
 0x570   :  { %2437 = vmatprep.subr.bf16.mxu0 %v2920_v34  ;;  %2469 = vmatprep.subr.bf16.mxu1 %v2988_v31 }
 0x573   :  { %2439 = vmatpush1.bf16.msra.mxu0 %v2929_v40  ;;  %2471 = vmatpush1.bf16.msra.mxu1 %v2991_v42 }
 0x574   :  { %2441 = vmatprep.subr.bf16.mxu0 %v2933_v41  ;;  %2473 = vmatprep.subr.bf16.mxu1 %v2994_v43 }
 0x577   :  { %2443 = vmatpush1.bf16.msra.mxu0 %v2941_v48  ;;  %2475 = vmatpush1.bf16.msra.mxu1 %v2997_v50 }
 0x578   :  { %2445 = vmatprep.subr.bf16.mxu0 %v2945_v49  ;;  %2477 = vmatprep.subr.bf16.mxu1 %v3000_v51 }
 0x57b   :  { %2447 = vmatpush1.bf16.msra.mxu0 %v2949_v54  ;;  %2479 = vmatpush1.bf16.msra.mxu1 %v3003_v56 }
 0x57c   :  { %2481 = vmatprep.subr.bf16.mxu0 %v2841_v3  ;;  %2513 = vmatprep.subr.bf16.mxu1 %v2953_v55  ;;  %v1226_v3 = vld [vmem:[#allocation2 + $0xa0] sm:$0xff]  ;;  %v1227_v55 = vld [vmem:[#allocation2 + $0xa8] sm:$0xff] }
 0x631   :  { %v1296_v52 = vpop.f32.mrb[8].mxu0  ;;  %v1367_v53 = vpop.f32.mrb[12].mxu1 }
 0x632   :  { %v1372_v57 = vadd.f32 %v1296_v52, %v1226_v3  ;;  %v1298_v62 = vpop.f32.mrb[9].mxu0  ;;  %v1369_v63 = vpop.f32.mrb[13].mxu1  ;;  %v1374_v11 = vadd.f32 %v1367_v53, %v1228_v0  ;;  %v1746_v0 = vld [vmem:[#allocation10 + $0x28] sm:$0xff] }
 0x633   :  { %v1373_v1 = vadd.f32 %v1298_v62, %v1227_v55  ;;  %v1375_v58 = vadd.f32 %v1369_v63, %v1229_v16  ;;  %v1741_v62 = vld [vmem:[#allocation10] sm:$0xff]  ;;  %v1743_v63 = vld [vmem:[#allocation10 + $0x10] sm:$0xff] }
 0x634   :  { %v1376_v6 = vmul.f32 0.5, %v1372_v57 }
 0x635   :  { %v1380_v10 = vmul.f32 0.5, %v1373_v1  ;;  %v1385_v19 = vmul.f32 0.5, %v1375_v58  ;;  %v1748_v1 = vld [vmem:[#allocation10 + $0x38] sm:$0xff] }
 0x636   :  { %2635 = vtanh.f32 %v1376_v6  ;;  %v2548_v58 = vpack.c.bf16 %v1748_v1, %v1746_v0 }
 0x637   :  { %2637 = vtanh.f32 %v1380_v10 }
 0x638   :  { %2639 = vtanh.f32 %v1374_v11  ;;  %v2546_v11 = vpack.c.bf16 %v1743_v63, %v1741_v62 }
 0x639   :  { %2641 = vtanh.f32 %v1385_v19  ;;  %v1745_v19 = vld [vmem:[#allocation10 + $0x20] sm:$0xff] }
 0x640   :  { %v2636_v24 = vpop.eup %2635 }
 0x641   :  { %v2638_v25 = vpop.eup %2637  ;;  %v1378_v28 = vmul.f32 0.5, %v2636_v24  ;;  %v1747_v24 = vld [vmem:[#allocation10 + $0x30] sm:$0xff] }
 0x642   :  { %v1382_v7 = vmul.f32 0.5, %v2638_v25  ;;  %v2640_v36 = vpop.eup %2639  ;;  %v1750_v25 = vld [vmem:[#allocation10 + $0x48] sm:$0xff] }
 0x643   :  { %v1379_v35 = vadd.f32 0.5, %v1378_v28  ;;  %v2642_v3 = vpop.eup %2641  ;;  %v1752_v28 = vld [vmem:[#allocation10 + $0x58] sm:$0xff] }
 0x644   :  { %v1383_v37 = vadd.f32 0.5, %v1382_v7  ;;  %v1387_v55 = vmul.f32 0.5, %v2642_v3  ;;  %v2550_v7 = vpack.c.bf16 %v1747_v24, %v1745_v19  ;;  %v1776_v24 = vshrl.u32 %v116_v32, 7 }
 0x645   :  { %v1390_v38 = vmul.f32 %v2640_v36, %v1379_v35  ;;  %v2552_v35 = vpack.c.bf16 %v1752_v28, %v1750_v25  ;;  %v1749_v36 = vld [vmem:[#allocation10 + $0x40] sm:$0xff] }
 0x646   :  { %v1389_v45 = vmul.f32 %v1383_v37, %v3214_v47  ;;  %v1388_v52 = vadd.f32 0.5, %v1387_v55  ;;  %v1751_v37 = vld [vmem:[#allocation10 + $0x50] sm:$0xff]  ;;  %v1753_v55 = vld [vmem:[#allocation10 + $0x60] sm:$0xff]  ;;  %v1777_v28 = vsub.s32 0, %v1776_v24 }
 0x648   :  { %v3262_v46 = vadd.f32 %v1390_v38, %v1389_v45  ;;  %v1754_v38 = vld [vmem:[#allocation10 + $0x68] sm:$0xff]  ;;  %v1756_v45 = vld [vmem:[#allocation10 + $0x78] sm:$0xff] }
 0x649   :  { %v2556_v3 = vpack.c.bf16 %v1756_v45, %v1754_v38 }
 0x64a   :  { %2643 = vtanh.f32 %v3262_v46 }
 0x654   :  { %v2644_v53 = vpop.eup %2643 }
 0x655   :  { %v3265_v57 = vmul.f32 %v2644_v53, %v1388_v52  ;;  %v1755_v52 = vld [vmem:[#allocation10 + $0x70] sm:$0xff]  ;;  %v1758_v53 = vld [vmem:[#allocation10 + $0x88] sm:$0xff] }
 0x657   :  { %1464 = vmatmul.mubr.f32.vlgmr.msra.gmra.mrb[10].mxu0 %v3265_v57  ;;  %1535 = vmatmul.mubr.f32.vlgmr.msra.gmra.mrb[14].mxu1 %v3265_v57 }
 0x658   :  { %2483 = vmatpush1.bf16.msra.mxu0 %v2879_v8  ;;  %2515 = vmatpush1.bf16.msra.mxu1 %v2957_v60  ;;  %v1742_v8 = vld [vmem:[#allocation10 + $0x8] sm:$0xff] }
 0x659   :  { %2485 = vmatprep.subr.bf16.mxu0 %v2881_v9  ;;  %2517 = vmatprep.subr.bf16.mxu1 %v2961_v61  ;;  %v1744_v9 = vld [vmem:[#allocation10 + $0x18] sm:$0xff] }
 0x65a   :  { %1632 = vmatprep.mubr.f32.mxu0 %v3225_v18  ;;  %1703 = vmatprep.mubr.f32.mxu1 %v3225_v18 }
 0x65c   :  { %2487 = vmatpush1.bf16.msra.mxu0 %v2888_v14  ;;  %2519 = vmatpush1.bf16.msra.mxu1 %v2966_v2  ;;  %v2544_v14 = vpack.c.bf16 %v1744_v9, %v1742_v8  ;;  %v1398_v2 = vld [vmem:[#allocation2 + $0xd8] sm:$0xff]  ;;  %v2558_v9 = vpack.c.bf16 %v1755_v52, %v1753_v55 }
 0x65d   :  { %2489 = vmatprep.subr.bf16.mxu0 %v2892_v15  ;;  %2521 = vmatprep.subr.bf16.mxu1 %v2970_v4  ;;  %v300_v15 = vld [vmem:[%s299_s14] ss:$8 sm:$0xf] }
 0x65e   :  { %302 = vst.msk [vmem:[#allocation2 + $0xe0] ss:$8 sm:$0xf] %vm2924_vm0, %v300_v15  ;;  %v1760_v8 = vld [vmem:[#allocation10 + $0x98] sm:$0xff]  ;;  %v1757_v15 = vld [vmem:[#allocation10 + $0x80] sm:$0xff] }
 0x660   :  { %2491 = vmatpush1.bf16.msra.mxu0 %v2896_v20  ;;  %2523 = vmatpush1.bf16.msra.mxu1 %v2973_v12  ;;  %v313_v20 = vld [vmem:[%s312_s16] ss:$8 sm:$0xf] }
 0x661   :  { %2493 = vmatprep.subr.bf16.mxu0 %v2900_v21  ;;  %2525 = vmatprep.subr.bf16.mxu1 %v2976_v13  ;;  %315 = vst.msk [vmem:[#allocation2 + $0xe1] ss:$8 sm:$0xf] %vm2924_vm0, %v313_v20  ;;  %v1395_v21 = vld [vmem:[#allocation2 + $0xc0] sm:$0xff]  ;;  %v1759_v20 = vld [vmem:[#allocation10 + $0x90] sm:$0xff] }
 0x664   :  { %2495 = vmatpush1.bf16.msra.mxu0 %v2906_v26  ;;  %2527 = vmatpush1.bf16.msra.mxu1 %v2979_v22  ;;  %v1396_v26 = vld [vmem:[#allocation2 + $0xc8] sm:$0xff] }
 0x665   :  { %2497 = vmatprep.subr.bf16.mxu0 %v2911_v27  ;;  %2529 = vmatprep.subr.bf16.mxu1 %v2982_v23 }
 0x668   :  { %2499 = vmatpush1.bf16.msra.mxu0 %v2916_v33  ;;  %2531 = vmatpush1.bf16.msra.mxu1 %v2985_v30 }
 0x669   :  { %2501 = vmatprep.subr.bf16.mxu0 %v2920_v34  ;;  %2533 = vmatprep.subr.bf16.mxu1 %v2988_v31 }
 0x66c   :  { %2503 = vmatpush1.bf16.msra.mxu0 %v2929_v40  ;;  %2535 = vmatpush1.bf16.msra.mxu1 %v2991_v42 }
 0x66d   :  { %2505 = vmatprep.subr.bf16.mxu0 %v2933_v41  ;;  %2537 = vmatprep.subr.bf16.mxu1 %v2994_v43 }
 0x670   :  { %2507 = vmatpush1.bf16.msra.mxu0 %v2941_v48  ;;  %2539 = vmatpush1.bf16.msra.mxu1 %v2997_v50  ;;  %v1397_v48 = vld [vmem:[#allocation2 + $0xd0] sm:$0xff] }
 0x671   :  { %2509 = vmatprep.subr.bf16.mxu0 %v2945_v49  ;;  %2541 = vmatprep.subr.bf16.mxu1 %v3000_v51 }
 0x674   :  { %2511 = vmatpush1.bf16.msra.mxu0 %v2949_v54  ;;  %2543 = vmatpush1.bf16.msra.mxu1 %v3003_v56 }
 0x675   :  { %2545 = vmatprep.subr.bf16.mxu0 %v2544_v14  ;;  %v2560_v14 = vpack.c.bf16 %v1760_v8, %v1758_v53 }
 0x72a   :  { %v1465_v27 = vpop.f32.mrb[10].mxu0  ;;  %v1536_v33 = vpop.f32.mrb[14].mxu1 }
 0x72b   :  { %v1541_v34 = vadd.f32 %v1465_v27, %v1395_v21  ;;  %v1467_v40 = vpop.f32.mrb[11].mxu0  ;;  %v1538_v41 = vpop.f32.mrb[15].mxu1  ;;  %v1543_v61 = vadd.f32 %v1536_v33, %v1397_v48  ;;  %v1762_v21 = vld [vmem:[#allocation10 + $0xa8] sm:$0xff]  ;;  %v2562_v27 = vpack.c.bf16 %v1759_v20, %v1757_v15  ;;  %v1768_v48 = vld [vmem:[#allocation10 + $0xd8] sm:$0xff] }
 0x72c   :  { %v1542_v49 = vadd.f32 %v1467_v40, %v1396_v26  ;;  %v1544_v4 = vadd.f32 %v1538_v41, %v1398_v2  ;;  %v1764_v26 = vld [vmem:[#allocation10 + $0xb8] sm:$0xff]  ;;  %v1763_v40 = vld [vmem:[#allocation10 + $0xb0] sm:$0xff]  ;;  %v1766_v41 = vld [vmem:[#allocation10 + $0xc8] sm:$0xff] }
 0x72d   :  { %v1545_v54 = vmul.f32 0.5, %v1541_v34  ;;  %v2564_v33 = vpack.c.bf16 %v1764_v26, %v1762_v21  ;;  %v1761_v34 = vld [vmem:[#allocation10 + $0xa0] sm:$0xff]  ;;  %v1770_v2 = vld [vmem:[#allocation10 + $0xe8] sm:$0xff] }
 0x72e   :  { %v1549_v60 = vmul.f32 0.5, %v1542_v49  ;;  %v1554_v12 = vmul.f32 0.5, %v1544_v4  ;;  %v2566_v49 = vpack.c.bf16 %v1763_v40, %v1761_v34  ;;  %v1772_v4 = vld [vmem:[#allocation10 + $0xf8] sm:$0xff] }
 0x72f   :  { %2645 = vtanh.f32 %v1545_v54  ;;  %v2568_v54 = vpack.c.bf16 %v1768_v48, %v1766_v41 }
 0x730   :  { %2647 = vtanh.f32 %v1549_v60  ;;  %v1765_v60 = vld [vmem:[#allocation10 + $0xc0] sm:$0xff] }
 0x731   :  { %2649 = vtanh.f32 %v1543_v61  ;;  %v1767_v61 = vld [vmem:[#allocation10 + $0xd0] sm:$0xff] }
 0x732   :  { %2651 = vtanh.f32 %v1554_v12  ;;  %v2570_v12 = vpack.c.bf16 %v1767_v61, %v1765_v60 }
 0x739   :  { %v2646_v39 = vpop.eup %2645 }
 0x73a   :  { %v2648_v13 = vpop.eup %2647  ;;  %v1547_v22 = vmul.f32 0.5, %v2646_v39  ;;  %v2572_v39 = vpack.c.bf16 %v1772_v4, %v1770_v2 }
 0x73b   :  { %v1551_v23 = vmul.f32 0.5, %v2648_v13  ;;  %v2650_v31 = vpop.eup %2649  ;;  %v1769_v13 = vld [vmem:[#allocation10 + $0xe0] sm:$0xff] }
 0x73c   :  { %v1548_v30 = vadd.f32 0.5, %v1547_v22  ;;  %v2652_v56 = vpop.eup %2651  ;;  %v1771_v22 = vld [vmem:[#allocation10 + $0xf0] sm:$0xff] }
 0x73d   :  { %v1552_v42 = vadd.f32 0.5, %v1551_v23  ;;  %v1556_v47 = vmul.f32 0.5, %v2652_v56  ;;  %v2574_v23 = vpack.c.bf16 %v1771_v22, %v1769_v13 }
 0x73e   :  { %v1559_v43 = vmul.f32 %v2650_v31, %v1548_v30 }
 0x73f   :  { %v1558_v50 = vmul.f32 %v1552_v42, %v3262_v46  ;;  %v1557_v6 = vadd.f32 0.5, %v1556_v47  ;;  %v2554_v46 = vpack.c.bf16 %v1751_v37, %v1749_v36 }
 0x741   :  { %v3306_v51 = vadd.f32 %v1559_v43, %v1558_v50  ;;  %v1566_v43 = vld [vmem:[#allocation2 + $0xf0] sm:$0xff] }
 0x743   :  { %2653 = vtanh.f32 %v3306_v51 }
 0x74d   :  { %v2654_v10 = vpop.eup %2653 }
 0x74e   :  { %v3309_v16 = vmul.f32 %v2654_v10, %v1557_v6 }
 0x750   :  { %1633 = vmatmul.mubr.f32.vlgmr.msra.gmra.mrb[12].mxu0 %v3309_v16  ;;  %1704 = vmatmul.mubr.f32.vlgmr.msra.gmra.mrb[16].mxu1 %v3309_v16 }
 0x751   :  { %2547 = vmatpush1.bf16.msra.mxu0 %v2546_v11  ;;  %1849 = vmatprep.mubr.f32.mxu0 %v3225_v18 }
 0x752   :  { %2549 = vmatprep.subr.bf16.mxu0 %v2548_v58 }
 0x755   :  { %2551 = vmatpush1.bf16.msra.mxu0 %v2550_v7  ;;  %v1773_v7 = vld [vmem:[%s3385_s4] sm:$0x3] }
 0x756   :  { %2553 = vmatprep.subr.bf16.mxu0 %v2552_v35  ;;  %v1781_v35 = vsub.s32 1, %v1776_v24  ;;  %v1778_v37 = vrot.slane %v1773_v7, %v1777_v28 }
 0x758   :  { %v1782_v45 = vrot.slane %v1773_v7, %v1781_v35 }
 0x759   :  { %2555 = vmatpush1.bf16.msra.mxu0 %v2554_v46 }
 0x75a   :  { %2557 = vmatprep.subr.bf16.mxu0 %v2556_v3 }
 0x75d   :  { %2559 = vmatpush1.bf16.msra.mxu0 %v2558_v9 }
 0x75e   :  { %2561 = vmatprep.subr.bf16.mxu0 %v2560_v14 }
 0x761   :  { %2563 = vmatpush1.bf16.msra.mxu0 %v2562_v27 }
 0x762   :  { %2565 = vmatprep.subr.bf16.mxu0 %v2564_v33 }
 0x765   :  { %2567 = vmatpush1.bf16.msra.mxu0 %v2566_v49 }
 0x766   :  { %2569 = vmatprep.subr.bf16.mxu0 %v2568_v54 }
 0x769   :  { %2571 = vmatpush1.bf16.msra.mxu0 %v2570_v12 }
 0x76a   :  { %2573 = vmatprep.subr.bf16.mxu0 %v2572_v39 }
 0x76d   :  { %2575 = vmatpush1.bf16.msra.mxu0 %v2574_v23 }
 0x770   :  { %1850 = vmatmul.mubr.f32.vlgmr.msra.gmra.mrb[14].mxu0 %v3033_v59  ;;  %v1564_v59 = vld [vmem:[#allocation2 + $0xe0] sm:$0xff] }
 0x771   :  { %1855 = vmatprep.mubr.f32.mxu0 %v3225_v18 }
 0x774   :  { %1856 = vmatmul.mubr.f32.gmra.mrb[16].mxu0 %v3079_v5  ;;  %v1565_v5 = vld [vmem:[#allocation2 + $0xe8] sm:$0xff] }
 0x775   :  { %1861 = vmatprep.mubr.f32.mxu0 %v3225_v18 }
 0x778   :  { %1862 = vmatmul.mubr.f32.gmra.mrb[18].mxu0 %v3125_v17 }
 0x779   :  { %1867 = vmatprep.mubr.f32.mxu0 %v3225_v18 }
 0x77c   :  { %1868 = vmatmul.mubr.f32.gmra.mrb[20].mxu0 %v3171_v29 }
 0x77d   :  { %1873 = vmatprep.mubr.f32.mxu0 %v3225_v18 }
 0x780   :  { %1874 = vmatmul.mubr.f32.gmra.mrb[22].mxu0 %v3217_v44 }
 0x781   :  { %1879 = vmatprep.mubr.f32.mxu0 %v3225_v18 }
 0x784   :  { %1880 = vmatmul.mubr.f32.gmra.mrb[24].mxu0 %v3265_v57  ;;  %v1567_v57 = vld [vmem:[#allocation2 + $0xf8] sm:$0xff] }
 0x785   :  { %1885 = vmatprep.mubr.f32.mxu0 %v3225_v18 }
 0x788   :  { %1886 = vmatmul.mubr.f32.gmra.mrb[26].mxu0 %v3309_v16 }
 0x789   :  { %1891 = vmatprep.mubr.f32.mxu0 %v3225_v18 }
 0x823   :  { %v1634_v17 = vpop.f32.mrb[12].mxu0  ;;  %v1705_v30 = vpop.f32.mrb[16].mxu1 }
 0x824   :  { %v1710_v31 = vadd.f32 %v1634_v17, %v1564_v59  ;;  %v1636_v29 = vpop.f32.mrb[13].mxu0  ;;  %v1707_v42 = vpop.f32.mrb[17].mxu1  ;;  %v1712_v47 = vadd.f32 %v1705_v30, %v1566_v43 }
 0x825   :  { %v1711_v50 = vadd.f32 %v1636_v29, %v1565_v5  ;;  %v1713_v62 = vadd.f32 %v1707_v42, %v1567_v57 }
 0x826   :  { %v1714_v44 = vmul.f32 0.5, %v1710_v31 }
 0x827   :  { %v1718_v56 = vmul.f32 0.5, %v1711_v50  ;;  %v1723_v63 = vmul.f32 0.5, %v1713_v62 }
 0x828   :  { %2655 = vtanh.f32 %v1714_v44 }
 0x829   :  { %2657 = vtanh.f32 %v1718_v56 }
 0x82a   :  { %2659 = vtanh.f32 %v1712_v47 }
 0x82b   :  { %2661 = vtanh.f32 %v1723_v63 }
 0x832   :  { %v2656_v0 = vpop.eup %2655 }
 0x833   :  { %v2658_v18 = vpop.eup %2657  ;;  %v1716_v1 = vmul.f32 0.5, %v2656_v0 }
 0x834   :  { %v1720_v6 = vmul.f32 0.5, %v2658_v18  ;;  %v2660_v11 = vpop.eup %2659 }
 0x835   :  { %v1717_v10 = vadd.f32 0.5, %v1716_v1  ;;  %v2662_v36 = vpop.eup %2661 }
 0x836   :  { %v1721_v16 = vadd.f32 0.5, %v1720_v6  ;;  %v1725_v38 = vmul.f32 0.5, %v2662_v36 }
 0x837   :  { %v1728_v58 = vmul.f32 %v2660_v11, %v1717_v10 }
 0x838   :  { %v1727_v19 = vmul.f32 %v1721_v16, %v3306_v51  ;;  %v1726_v52 = vadd.f32 0.5, %v1725_v38 }
 0x83a   :  { %v1729_v25 = vadd.f32 %v1728_v58, %v1727_v19 }
 0x83c   :  { %2663 = vtanh.f32 %v1729_v25 }
 0x843   :  { %v1851_v46 = vpop.f32.mrb[14].mxu0 }
 0x844   :  { %v1852_v3 = vadd.f32 %v1851_v46, %v1778_v37  ;;  %v1853_v55 = vpop.f32.mrb[15].mxu0 }
 0x845   :  { %v1854_v53 = vadd.f32 %v1853_v55, %v1782_v45 }
 0x846   :  { %v2664_v51 = vpop.eup %2663  ;;  %1898 = vst [vmem:[%s3386_s5] sm:$0xff] %v1852_v3 }
 0x847   :  { %1899 = vst [vmem:[%s3386_s5 + $0x8] sm:$0xff] %v1854_v53  ;;  %v1857_v32 = vpop.f32.mrb[16].mxu0  ;;  %v1731_v8 = vmul.f32 %v2664_v51, %v1726_v52 }
 0x848   :  { %v1858_v9 = vadd.f32 %v1857_v32, %v1778_v37  ;;  %v1859_v14 = vpop.f32.mrb[17].mxu0 }
 0x849   :  { %v1860_v15 = vadd.f32 %v1859_v14, %v1782_v45  ;;  %1892 = vmatmul.mubr.f32.gmra.mrb[28].mxu0 %v1731_v8 }
 0x84a   :  { %1900 = vst [vmem:[%s3386_s5 + $0x10] sm:$0xff] %v1858_v9 }
 0x84b   :  { %1901 = vst [vmem:[%s3386_s5 + $0x18] sm:$0xff] %v1860_v15  ;;  %v1863_v20 = vpop.f32.mrb[18].mxu0 }
 0x84c   :  { %v1864_v21 = vadd.f32 %v1863_v20, %v1778_v37  ;;  %v1865_v26 = vpop.f32.mrb[19].mxu0 }
 0x84d   :  { %v1866_v27 = vadd.f32 %v1865_v26, %v1782_v45 }
 0x84e   :  { %1902 = vst [vmem:[%s3386_s5 + $0x20] sm:$0xff] %v1864_v21 }
 0x84f   :  { %1903 = vst [vmem:[%s3386_s5 + $0x28] sm:$0xff] %v1866_v27  ;;  %v1869_v33 = vpop.f32.mrb[20].mxu0 }
 0x850   :  { %v1870_v34 = vadd.f32 %v1869_v33, %v1778_v37  ;;  %v1871_v40 = vpop.f32.mrb[21].mxu0 }
 0x851   :  { %v1872_v41 = vadd.f32 %v1871_v40, %v1782_v45 }
 0x852   :  { %1904 = vst [vmem:[%s3386_s5 + $0x30] sm:$0xff] %v1870_v34 }
 0x853   :  { %1905 = vst [vmem:[%s3386_s5 + $0x38] sm:$0xff] %v1872_v41  ;;  %v1875_v48 = vpop.f32.mrb[22].mxu0 }
 0x854   :  { %v1876_v49 = vadd.f32 %v1875_v48, %v1778_v37  ;;  %v1877_v54 = vpop.f32.mrb[23].mxu0 }
 0x855   :  { %v1878_v60 = vadd.f32 %v1877_v54, %v1782_v45 }
 0x856   :  { %1906 = vst [vmem:[%s3386_s5 + $0x40] sm:$0xff] %v1876_v49 }
 0x857   :  { %1907 = vst [vmem:[%s3386_s5 + $0x48] sm:$0xff] %v1878_v60  ;;  %v1881_v61 = vpop.f32.mrb[24].mxu0 }
 0x858   :  { %v1882_v2 = vadd.f32 %v1881_v61, %v1778_v37  ;;  %v1883_v4 = vpop.f32.mrb[25].mxu0 }
 0x859   :  { %v1884_v12 = vadd.f32 %v1883_v4, %v1782_v45 }
 0x85a   :  { %1908 = vst [vmem:[%s3386_s5 + $0x50] sm:$0xff] %v1882_v2 }
 0x85b   :  { %1909 = vst [vmem:[%s3386_s5 + $0x58] sm:$0xff] %v1884_v12  ;;  %v1887_v39 = vpop.f32.mrb[26].mxu0 }
 0x85c   :  { %v1888_v13 = vadd.f32 %v1887_v39, %v1778_v37  ;;  %v1889_v22 = vpop.f32.mrb[27].mxu0 }
 0x85d   :  { %v1890_v23 = vadd.f32 %v1889_v22, %v1782_v45 }
 0x85e   :  { %1910 = vst [vmem:[%s3386_s5 + $0x60] sm:$0xff] %v1888_v13 }
 0x85f   :  { %1911 = vst [vmem:[%s3386_s5 + $0x68] sm:$0xff] %v1890_v23 }
 0x91c   :  { %v1893_v59 = vpop.f32.mrb[28].mxu0 }
 0x91d   :  { %v1894_v5 = vadd.f32 %v1893_v59, %v1778_v37  ;;  %v1895_v17 = vpop.f32.mrb[29].mxu0 }
 0x91e   :  { %v1896_v30 = vadd.f32 %v1895_v17, %v1782_v45 }
 0x91f   :  { %1912 = vst [vmem:[%s3386_s5 + $0x70] sm:$0xff] %v1894_v5 }
 0x920   :  { %1913 = vst [vmem:[%s3386_s5 + $0x78] sm:$0xff] %v1896_v30 }
 0x921   :  { %1918 = vsyncpa [#allocation5], 1 }
 0x922   :  { %1919 = vsyncpa [#allocation9], 1 }
 0x923   :  { %1920 = vsyncpa [#allocation6], 1 }

</bundles_post_ra>
